<compile_context>
chip_gen: v7x
topology: tpu7x:2x2x1
jax: 0.10.0
libtpu: 0.0.40
codegen_flags: <defaults>
</compile_context>

<pallas_src>
import math

import jax
import jax.numpy as jnp
from jax import lax
from jax.experimental import pallas as pl
from jax.experimental.pallas import tpu as pltpu

F32 = jnp.float32
LANES = 128          # padded channel / hidden width (exactly one f32 vreg wide)
NEG = -1e30          # "-inf" for masked top-k scores


# ----------------------------------------------------------------------------- kernel
def make_gcn_forward_kernel(npg, k1, k2):
    """Whole GCN forward for ONE graph; the grid iterates / parallelizes over graphs."""

    def gcn_conv_relu(a_hat, x, wt, b):
        # D^-1/2 (A+I) D^-1/2 X W^T + b  ==  dis * ((A+I) @ (dis * (X W^T))) + b
        # (degree >= 1 always: every node keeps a self loop, masked or not)
        dis = lax.rsqrt(jnp.sum(a_hat, axis=1, keepdims=True))          # (npg, 1)
        xw = jnp.dot(x, wt, preferred_element_type=jnp.float32)          # (npg, LANES)
        h = dis * jnp.dot(a_hat, dis * xw, preferred_element_type=jnp.float32) + b
        return jnp.maximum(h, 0.0)                                        # F.relu

    def topk_masks(score, valid, k):
        """Unrolled iterative argmax (k static & tiny) -> node masks.

        Returns the selection mask in both orientations ((npg,1) and (1,npg)) so
        the adjacency can be row+column masked with two broadcast multiplies —
        no argsort, no transpose, no gather."""
        idx_c = lax.broadcasted_iota(jnp.int32, (npg, 1), 0).astype(F32)
        idx_r = lax.broadcasted_iota(jnp.int32, (1, npg), 1).astype(F32)
        avail = jnp.where(valid > 0, score, NEG)
        m_col = jnp.zeros((npg, 1), F32)
        m_row = jnp.zeros((1, npg), F32)
        for _ in range(k):
            mx = jnp.max(avail, axis=0, keepdims=True)                   # (1,1)
            cand = jnp.where(avail >= mx, idx_c, float(npg))             # first-max tie break
            pick = jnp.min(cand, axis=0, keepdims=True)                  # (1,1)
            hit_c = (idx_c == pick).astype(F32)
            m_col = m_col + hit_c
            m_row = m_row + (idx_r == pick).astype(F32)
            avail = jnp.where(hit_c > 0, NEG, avail)
        return m_col, m_row

    def kernel(adj_ref, x_ref, w1t_ref, b1_ref, w2t_ref, b2_ref, w3t_ref, b3_ref,
               p_ref, w1a_ref, w1b_ref, w1c_ref, lb1_ref, lw2t_ref, lb2_ref,
               lw3_ref, lb3_ref, out_ref):
        a = adj_ref[0]                                   # (npg, npg) raw adjacency, no self loops
        x = x_ref[0]                                     # (npg, LANES) zero-padded features
        p = p_ref[...]                                   # (1, LANES), pre-normalized projection
        row = lax.broadcasted_iota(jnp.int32, (npg, npg), 0)
        col = lax.broadcasted_iota(jnp.int32, (npg, npg), 1)
        eye = (row == col).astype(F32)                   # built once, reused by all 3 layers

        # ---- layer 1: conv1 + relu + global_add_pool + TopKPooling(0.5) ----
        h1 = gcn_conv_relu(a + eye, x, w1t_ref[...], b1_ref[...])
        x1 = jnp.sum(h1, axis=0, keepdims=True)                          # (1, LANES)
        s1 = jnp.tanh(jnp.sum(h1 * p, axis=-1, keepdims=True))           # (npg, 1)
        m1c, m1r = topk_masks(s1, jnp.ones((npg, 1), F32), k1)
        g1 = h1 * s1 * m1c                                               # x[perm]*score, masked in place

        # ---- layer 2: conv2 on the top-k subgraph (masked, not gathered) ----
        # a*(m1c*m1r) keeps only edges between kept nodes; +eye restores every
        # node's self loop so no degree is zero (dropped nodes are masked below).
        h2 = gcn_conv_relu(a * (m1c * m1r) + eye, g1, w2t_ref[...], b2_ref[...]) * m1c
        x2 = jnp.sum(h2, axis=0, keepdims=True)
        s2 = jnp.tanh(jnp.sum(h2 * p, axis=-1, keepdims=True))
        m2c, m2r = topk_masks(s2, m1c, k2)                               # select among kept nodes only
        g2 = h2 * s2 * m2c

        # ---- layer 3: conv3 + relu + global_add_pool ----
        h3 = gcn_conv_relu(a * (m2c * m2r) + eye, g2, w3t_ref[...], b3_ref[...]) * m2c
        x3 = jnp.sum(h3, axis=0, keepdims=True)

        # ---- MLP head: cat([x1,x2,x3]) @ W1^T done as three split matmuls ----
        y = (jnp.dot(x1, w1a_ref[...], preferred_element_type=jnp.float32)
             + jnp.dot(x2, w1b_ref[...], preferred_element_type=jnp.float32)
             + jnp.dot(x3, w1c_ref[...], preferred_element_type=jnp.float32)
             + lb1_ref[...])
        y = jnp.maximum(y, 0.0)                                          # lin1 + relu
        y = jnp.dot(y, lw2t_ref[...], preferred_element_type=jnp.float32) + lb2_ref[...]
        y = jnp.maximum(y, 0.0)                                          # lin2 + relu
        # lin3: (1, H) against the (1, H) weight row as a VPU lane reduce.
        y = jnp.sum(y * lw3_ref[...], axis=-1, keepdims=True) + lb3_ref[...]   # (1, 1)
        y = pl.reciprocal(1.0 + jnp.exp(-y), approx=True)                # sigmoid (exp + EUP rcp)
        out_ref[0] = jnp.broadcast_to(y, (1, LANES))                     # lane-dense store

    return kernel


# ----------------------------------------------------------------------------- wrapper
def gcn_pallas_forward(params, x, adj_blocks, num_graphs, nodes_per_graph):
    """Single pallas_call for the whole forward; grid=(num_graphs,), 'parallel'."""
    npg = nodes_per_graph
    k1 = math.ceil(0.5 * npg)        # TopKPooling ratio=0.5, applied twice
    k2 = math.ceil(0.5 * k1)
    n, c = x.shape

    # One-time zero pad of the node features to a lane-dense width.
    x_pad = jnp.zeros((num_graphs, npg, LANES), F32).at[:, :, :c].set(
        x.reshape(num_graphs, npg, c))

    weights = (params["w1t"], params["b1"], params["w2t"], params["b2"],
               params["w3t"], params["b3"], params["p"],
               params["lw1a"], params["lw1b"], params["lw1c"], params["lb1"],
               params["lw2t"], params["lb2"], params["lw3"], params["lb3"])

    in_specs = [
        pl.BlockSpec((1, npg, npg), lambda g: (g, 0, 0)),      # this graph's adjacency
        pl.BlockSpec((1, npg, LANES), lambda g: (g, 0, 0)),    # this graph's features
    ] + [pl.BlockSpec(w.shape, lambda g, nd=w.ndim: (0,) * nd) for w in weights]

    out = pl.pallas_call(
        make_gcn_forward_kernel(npg, k1, k2),
        grid=(num_graphs,),
        in_specs=in_specs,
        out_specs=pl.BlockSpec((1, 1, LANES), lambda g: (g, 0, 0)),
        out_shape=jax.ShapeDtypeStruct((num_graphs, 1, LANES), F32),
        compiler_params=pltpu.CompilerParams(
            dimension_semantics=("parallel",)),   # v7x: graphs split across the 2 TensorCores
    )(adj_blocks, x_pad, *weights)
    return out[:, 0, :1]                          # (num_graphs, 1)


# ----------------------------------------------------------------------------- params/data
def _pad2(a, rows, cols):
    out = jnp.zeros((rows, cols), F32)
    return out.at[:a.shape[0], :a.shape[1]].set(a.astype(F32))


def init_params(key):
    """Weights pre-transposed, pre-split and zero-padded to 128 lanes at init."""
    ks = jax.random.split(key, 13)
    rnd = lambda k, s: (0.1 * jax.random.normal(k, s)).astype(F32)
    w1, b1 = rnd(ks[0], (19, 19)), rnd(ks[1], (19,))
    w2, b2 = rnd(ks[2], (19, 19)), rnd(ks[3], (19,))
    w3, b3 = rnd(ks[4], (19, 19)), rnd(ks[5], (19,))
    p = rnd(ks[6], (19,))                       # TopKPooling(19) projection (shared module)
    lw1, lb1 = rnd(ks[7], (32, 57)), rnd(ks[8], (32,))
    lw2, lb2 = rnd(ks[9], (10, 32)), rnd(ks[10], (10,))
    lw3, lb3 = rnd(ks[11], (1, 10)), rnd(ks[12], (1,))

    p_hat = p / jnp.sqrt(jnp.sum(p * p))        # pre-normalized: no in-kernel ||p||
    lw1t = lw1.T                                # (57, 32), split by concat segment
    return {
        "w1t": _pad2(w1.T, LANES, LANES), "b1": _pad2(b1.reshape(1, -1), 1, LANES),
        "w2t": _pad2(w2.T, LANES, LANES), "b2": _pad2(b2.reshape(1, -1), 1, LANES),
        "w3t": _pad2(w3.T, LANES, LANES), "b3": _pad2(b3.reshape(1, -1), 1, LANES),
        "p":   _pad2(p_hat.reshape(1, -1), 1, LANES),
        "lw1a": _pad2(lw1t[0:19], LANES, LANES),
        "lw1b": _pad2(lw1t[19:38], LANES, LANES),
        "lw1c": _pad2(lw1t[38:57], LANES, LANES),
        "lb1": _pad2(lb1.reshape(1, -1), 1, LANES),
        "lw2t": _pad2(lw2.T, LANES, LANES), "lb2": _pad2(lb2.reshape(1, -1), 1, LANES),
        "lw3": _pad2(lw3, 1, LANES), "lb3": lb3.reshape(1, 1),
    }


def make_adjacency(num_graphs, nodes_per_graph):
    """Deterministic symmetric per-graph adjacency (ring + chord), no self loops."""
    a = jnp.zeros((num_graphs, nodes_per_graph, nodes_per_graph), F32)
    idx = jnp.arange(nodes_per_graph)
    for g in range(num_graphs):
        for step in (1, 2):
            dst = (idx + step) % nodes_per_graph
            a = a.at[g, dst, idx].set(1.0)
            a = a.at[g, idx, dst].set(1.0)
    return a


# ----------------------------------------------------------------------------- main
if __name__ == "__main__":
    num_graphs = 2
    nodes_per_graph = 8
    n_total = num_graphs * nodes_per_graph

    key = jax.random.PRNGKey(0)
    k_param, k_x = jax.random.split(key)
    params = init_params(k_param)

    x = jax.random.normal(k_x, (n_total, 19), dtype=F32)   # data.x
    adj = make_adjacency(num_graphs, nodes_per_graph)      # data.edge_index (dense, per graph)

    fwd = jax.jit(gcn_pallas_forward, static_argnums=(3, 4))
    out = jax.block_until_ready(fwd(params, x, adj, num_graphs, nodes_per_graph))

    assert out.shape == (num_graphs, 1)
    assert bool(jnp.all((out >= 0.0) & (out <= 1.0)))
    print("KERNEL_OK")
</pallas_src>

<mosaic_0001>
module attributes {stable_mosaic.version = 11 : i64} {
  func.func @kernel(%arg0: i32, %arg1: memref<1x8x8xf32, #tpu.memory_space<vmem>>, %arg2: memref<1x8x128xf32, #tpu.memory_space<vmem>>, %arg3: memref<128x128xf32, #tpu.memory_space<vmem>>, %arg4: memref<1x128xf32, #tpu.memory_space<vmem>>, %arg5: memref<128x128xf32, #tpu.memory_space<vmem>>, %arg6: memref<1x128xf32, #tpu.memory_space<vmem>>, %arg7: memref<128x128xf32, #tpu.memory_space<vmem>>, %arg8: memref<1x128xf32, #tpu.memory_space<vmem>>, %arg9: memref<1x128xf32, #tpu.memory_space<vmem>>, %arg10: memref<128x128xf32, #tpu.memory_space<vmem>>, %arg11: memref<128x128xf32, #tpu.memory_space<vmem>>, %arg12: memref<128x128xf32, #tpu.memory_space<vmem>>, %arg13: memref<1x128xf32, #tpu.memory_space<vmem>>, %arg14: memref<128x128xf32, #tpu.memory_space<vmem>>, %arg15: memref<1x128xf32, #tpu.memory_space<vmem>>, %arg16: memref<1x128xf32, #tpu.memory_space<vmem>>, %arg17: memref<1x1xf32, #tpu.memory_space<vmem>>, %arg18: memref<1x1x128xf32, #tpu.memory_space<vmem>>) attributes {dimension_semantics = [#tpu.dimension_semantics<parallel>], iteration_bounds = array<i64: 2>, scalar_prefetch = 0 : i64, scratch_operands = 0 : i64, tpu.core_type = #tpu.core_type<tc>, window_params = [{transform_indices = @transform_0, window_bounds = array<i64: 1, 8, 8>}, {transform_indices = @transform_1, window_bounds = array<i64: 1, 8, 128>}, {pipeline_mode = #tpu.pipeline_mode<synchronous>, transform_indices = @transform_2, window_bounds = array<i64: 128, 128>}, {pipeline_mode = #tpu.pipeline_mode<synchronous>, transform_indices = @transform_3, window_bounds = array<i64: 1, 128>}, {pipeline_mode = #tpu.pipeline_mode<synchronous>, transform_indices = @transform_4, window_bounds = array<i64: 128, 128>}, {pipeline_mode = #tpu.pipeline_mode<synchronous>, transform_indices = @transform_5, window_bounds = array<i64: 1, 128>}, {pipeline_mode = #tpu.pipeline_mode<synchronous>, transform_indices = @transform_6, window_bounds = array<i64: 128, 128>}, {pipeline_mode = #tpu.pipeline_mode<synchronous>, transform_indices = @transform_7, window_bounds = array<i64: 1, 128>}, {pipeline_mode = #tpu.pipeline_mode<synchronous>, transform_indices = @transform_8, window_bounds = array<i64: 1, 128>}, {pipeline_mode = #tpu.pipeline_mode<synchronous>, transform_indices = @transform_9, window_bounds = array<i64: 128, 128>}, {pipeline_mode = #tpu.pipeline_mode<synchronous>, transform_indices = @transform_10, window_bounds = array<i64: 128, 128>}, {pipeline_mode = #tpu.pipeline_mode<synchronous>, transform_indices = @transform_11, window_bounds = array<i64: 128, 128>}, {pipeline_mode = #tpu.pipeline_mode<synchronous>, transform_indices = @transform_12, window_bounds = array<i64: 1, 128>}, {pipeline_mode = #tpu.pipeline_mode<synchronous>, transform_indices = @transform_13, window_bounds = array<i64: 128, 128>}, {pipeline_mode = #tpu.pipeline_mode<synchronous>, transform_indices = @transform_14, window_bounds = array<i64: 1, 128>}, {pipeline_mode = #tpu.pipeline_mode<synchronous>, transform_indices = @transform_15, window_bounds = array<i64: 1, 128>}, {pipeline_mode = #tpu.pipeline_mode<synchronous>, transform_indices = @transform_16, window_bounds = array<i64: 1, 1>}, {transform_indices = @transform_17, window_bounds = array<i64: 1, 1, 128>}]} {
    %c0 = arith.constant 0 : index
    %c0_0 = arith.constant 0 : index
    %c0_1 = arith.constant 0 : index
    %0 = vector.load %arg1[%c0, %c0_0, %c0_1] : memref<1x8x8xf32, #tpu.memory_space<vmem>>, vector<1x8x8xf32>
    %1 = vector.shape_cast %0 : vector<1x8x8xf32> to vector<8x8xf32>
    %c0_2 = arith.constant 0 : index
    %c0_3 = arith.constant 0 : index
    %c0_4 = arith.constant 0 : index
    %2 = vector.load %arg2[%c0_2, %c0_3, %c0_4] : memref<1x8x128xf32, #tpu.memory_space<vmem>>, vector<1x8x128xf32>
    %3 = vector.shape_cast %2 : vector<1x8x128xf32> to vector<8x128xf32>
    %c0_5 = arith.constant 0 : index
    %c0_6 = arith.constant 0 : index
    %4 = vector.load %arg9[%c0_5, %c0_6] : memref<1x128xf32, #tpu.memory_space<vmem>>, vector<1x128xf32>
    %5 = tpu.iota {dimensions = array<i32: 0>} : vector<8x8xi32>
    %6 = tpu.iota {dimensions = array<i32: 1>} : vector<8x8xi32>
    %7 = arith.cmpi eq, %5, %6 : vector<8x8xi32>
    %8 = arith.extui %7 : vector<8x8xi1> to vector<8x8xi32>
    %9 = arith.sitofp %8 : vector<8x8xi32> to vector<8x8xf32>
    %10 = arith.addf %1, %9 : vector<8x8xf32>
    %c0_7 = arith.constant 0 : index
    %c0_8 = arith.constant 0 : index
    %11 = vector.load %arg3[%c0_7, %c0_8] : memref<128x128xf32, #tpu.memory_space<vmem>>, vector<128x128xf32>
    %c0_9 = arith.constant 0 : index
    %c0_10 = arith.constant 0 : index
    %12 = vector.load %arg4[%c0_9, %c0_10] : memref<1x128xf32, #tpu.memory_space<vmem>>, vector<1x128xf32>
    %cst = arith.constant dense<0.000000e+00> : vector<8xf32>
    %13 = vector.multi_reduction <add>, %10, %cst [1] : vector<8x8xf32> to vector<8xf32>
    %14 = vector.shape_cast %13 : vector<8xf32> to vector<8x1xf32>
    %15 = math.rsqrt %14 : vector<8x1xf32>
    %cst_11 = arith.constant dense<0.000000e+00> : vector<8x128xf32>
    %16 = tpu.matmul %3, %11, %cst_11 {dimension_numbers = #tpu.dot_dimension_numbers<[1], [0], [0], [1], [0, 0, 1, 1], [], []>} : vector<8x128xf32>, vector<128x128xf32>, vector<8x128xf32> -> vector<8x128xf32>
    %17 = vector.broadcast %15 : vector<8x1xf32> to vector<8x128xf32>
    %18 = arith.mulf %17, %16 : vector<8x128xf32>
    %cst_12 = arith.constant dense<0.000000e+00> : vector<8x128xf32>
    %19 = tpu.matmul %10, %18, %cst_12 {dimension_numbers = #tpu.dot_dimension_numbers<[1], [0], [0], [1], [0, 0, 1, 1], [], []>} : vector<8x8xf32>, vector<8x128xf32>, vector<8x128xf32> -> vector<8x128xf32>
    %20 = vector.broadcast %15 : vector<8x1xf32> to vector<8x128xf32>
    %21 = arith.mulf %20, %19 : vector<8x128xf32>
    %22 = vector.broadcast %12 : vector<1x128xf32> to vector<8x128xf32>
    %23 = arith.addf %21, %22 : vector<8x128xf32>
    %cst_13 = arith.constant 0.000000e+00 : f32
    %24 = vector.broadcast %cst_13 : f32 to vector<8x128xf32>
    %25 = arith.maximumf %23, %24 : vector<8x128xf32>
    %cst_14 = arith.constant dense<0.000000e+00> : vector<128xf32>
    %26 = vector.multi_reduction <add>, %25, %cst_14 [0] : vector<8x128xf32> to vector<128xf32>
    %27 = vector.shape_cast %26 : vector<128xf32> to vector<1x128xf32>
    %28 = vector.broadcast %4 : vector<1x128xf32> to vector<8x128xf32>
    %29 = arith.mulf %25, %28 : vector<8x128xf32>
    %cst_15 = arith.constant dense<0.000000e+00> : vector<8xf32>
    %30 = vector.multi_reduction <add>, %29, %cst_15 [1] : vector<8x128xf32> to vector<8xf32>
    %31 = vector.shape_cast %30 : vector<8xf32> to vector<8x1xf32>
    %32 = math.tanh %31 : vector<8x1xf32>
    %cst_16 = arith.constant 1.000000e+00 : f32
    %33 = vector.broadcast %cst_16 : f32 to vector<8x1xf32>
    %34 = tpu.iota {dimensions = array<i32: 0>} : vector<8x1xi32>
    %35 = arith.sitofp %34 : vector<8x1xi32> to vector<8x1xf32>
    %36 = tpu.iota {dimensions = array<i32: 1>} : vector<1x8xi32>
    %37 = arith.sitofp %36 : vector<1x8xi32> to vector<1x8xf32>
    %cst_17 = arith.constant 0.000000e+00 : f32
    %38 = vector.broadcast %cst_17 : f32 to vector<8x1xf32>
    %39 = arith.cmpf ogt, %33, %38 : vector<8x1xf32>
    %cst_18 = arith.constant -1.000000e+30 : f32
    %40 = vector.broadcast %cst_18 : f32 to vector<8x1xf32>
    %41 = arith.select %39, %32, %40 : vector<8x1xi1>, vector<8x1xf32>
    %cst_19 = arith.constant 0.000000e+00 : f32
    %42 = vector.broadcast %cst_19 : f32 to vector<8x1xf32>
    %cst_20 = arith.constant 0.000000e+00 : f32
    %43 = vector.broadcast %cst_20 : f32 to vector<1x8xf32>
    %cst_21 = arith.constant dense<0xFF800000> : vector<1xf32>
    %44 = vector.multi_reduction <maximumf>, %41, %cst_21 [0] : vector<8x1xf32> to vector<1xf32>
    %45 = vector.shape_cast %44 : vector<1xf32> to vector<1x1xf32>
    %46 = vector.broadcast %45 : vector<1x1xf32> to vector<8x1xf32>
    %47 = arith.cmpf oge, %41, %46 : vector<8x1xf32>
    %cst_22 = arith.constant 8.000000e+00 : f32
    %48 = vector.broadcast %cst_22 : f32 to vector<8x1xf32>
    %49 = arith.select %47, %35, %48 : vector<8x1xi1>, vector<8x1xf32>
    %cst_23 = arith.constant dense<0x7F800000> : vector<1xf32>
    %50 = vector.multi_reduction <minimumf>, %49, %cst_23 [0] : vector<8x1xf32> to vector<1xf32>
    %51 = vector.shape_cast %50 : vector<1xf32> to vector<1x1xf32>
    %52 = vector.broadcast %51 : vector<1x1xf32> to vector<8x1xf32>
    %53 = arith.cmpf oeq, %35, %52 : vector<8x1xf32>
    %54 = arith.extui %53 : vector<8x1xi1> to vector<8x1xi32>
    %55 = arith.sitofp %54 : vector<8x1xi32> to vector<8x1xf32>
    %56 = arith.addf %42, %55 : vector<8x1xf32>
    %57 = vector.broadcast %51 : vector<1x1xf32> to vector<1x8xf32>
    %58 = arith.cmpf oeq, %37, %57 : vector<1x8xf32>
    %59 = arith.extui %58 : vector<1x8xi1> to vector<1x8xi32>
    %60 = arith.sitofp %59 : vector<1x8xi32> to vector<1x8xf32>
    %61 = arith.addf %43, %60 : vector<1x8xf32>
    %cst_24 = arith.constant 0.000000e+00 : f32
    %62 = vector.broadcast %cst_24 : f32 to vector<8x1xf32>
    %63 = arith.cmpf ogt, %55, %62 : vector<8x1xf32>
    %cst_25 = arith.constant -1.000000e+30 : f32
    %64 = vector.broadcast %cst_25 : f32 to vector<8x1xf32>
    %65 = arith.select %63, %64, %41 : vector<8x1xi1>, vector<8x1xf32>
    %cst_26 = arith.constant dense<0xFF800000> : vector<1xf32>
    %66 = vector.multi_reduction <maximumf>, %65, %cst_26 [0] : vector<8x1xf32> to vector<1xf32>
    %67 = vector.shape_cast %66 : vector<1xf32> to vector<1x1xf32>
    %68 = vector.broadcast %67 : vector<1x1xf32> to vector<8x1xf32>
    %69 = arith.cmpf oge, %65, %68 : vector<8x1xf32>
    %cst_27 = arith.constant 8.000000e+00 : f32
    %70 = vector.broadcast %cst_27 : f32 to vector<8x1xf32>
    %71 = arith.select %69, %35, %70 : vector<8x1xi1>, vector<8x1xf32>
    %cst_28 = arith.constant dense<0x7F800000> : vector<1xf32>
    %72 = vector.multi_reduction <minimumf>, %71, %cst_28 [0] : vector<8x1xf32> to vector<1xf32>
    %73 = vector.shape_cast %72 : vector<1xf32> to vector<1x1xf32>
    %74 = vector.broadcast %73 : vector<1x1xf32> to vector<8x1xf32>
    %75 = arith.cmpf oeq, %35, %74 : vector<8x1xf32>
    %76 = arith.extui %75 : vector<8x1xi1> to vector<8x1xi32>
    %77 = arith.sitofp %76 : vector<8x1xi32> to vector<8x1xf32>
    %78 = arith.addf %56, %77 : vector<8x1xf32>
    %79 = vector.broadcast %73 : vector<1x1xf32> to vector<1x8xf32>
    %80 = arith.cmpf oeq, %37, %79 : vector<1x8xf32>
    %81 = arith.extui %80 : vector<1x8xi1> to vector<1x8xi32>
    %82 = arith.sitofp %81 : vector<1x8xi32> to vector<1x8xf32>
    %83 = arith.addf %61, %82 : vector<1x8xf32>
    %cst_29 = arith.constant 0.000000e+00 : f32
    %84 = vector.broadcast %cst_29 : f32 to vector<8x1xf32>
    %85 = arith.cmpf ogt, %77, %84 : vector<8x1xf32>
    %cst_30 = arith.constant -1.000000e+30 : f32
    %86 = vector.broadcast %cst_30 : f32 to vector<8x1xf32>
    %87 = arith.select %85, %86, %65 : vector<8x1xi1>, vector<8x1xf32>
    %cst_31 = arith.constant dense<0xFF800000> : vector<1xf32>
    %88 = vector.multi_reduction <maximumf>, %87, %cst_31 [0] : vector<8x1xf32> to vector<1xf32>
    %89 = vector.shape_cast %88 : vector<1xf32> to vector<1x1xf32>
    %90 = vector.broadcast %89 : vector<1x1xf32> to vector<8x1xf32>
    %91 = arith.cmpf oge, %87, %90 : vector<8x1xf32>
    %cst_32 = arith.constant 8.000000e+00 : f32
    %92 = vector.broadcast %cst_32 : f32 to vector<8x1xf32>
    %93 = arith.select %91, %35, %92 : vector<8x1xi1>, vector<8x1xf32>
    %cst_33 = arith.constant dense<0x7F800000> : vector<1xf32>
    %94 = vector.multi_reduction <minimumf>, %93, %cst_33 [0] : vector<8x1xf32> to vector<1xf32>
    %95 = vector.shape_cast %94 : vector<1xf32> to vector<1x1xf32>
    %96 = vector.broadcast %95 : vector<1x1xf32> to vector<8x1xf32>
    %97 = arith.cmpf oeq, %35, %96 : vector<8x1xf32>
    %98 = arith.extui %97 : vector<8x1xi1> to vector<8x1xi32>
    %99 = arith.sitofp %98 : vector<8x1xi32> to vector<8x1xf32>
    %100 = arith.addf %78, %99 : vector<8x1xf32>
    %101 = vector.broadcast %95 : vector<1x1xf32> to vector<1x8xf32>
    %102 = arith.cmpf oeq, %37, %101 : vector<1x8xf32>
    %103 = arith.extui %102 : vector<1x8xi1> to vector<1x8xi32>
    %104 = arith.sitofp %103 : vector<1x8xi32> to vector<1x8xf32>
    %105 = arith.addf %83, %104 : vector<1x8xf32>
    %cst_34 = arith.constant 0.000000e+00 : f32
    %106 = vector.broadcast %cst_34 : f32 to vector<8x1xf32>
    %107 = arith.cmpf ogt, %99, %106 : vector<8x1xf32>
    %cst_35 = arith.constant -1.000000e+30 : f32
    %108 = vector.broadcast %cst_35 : f32 to vector<8x1xf32>
    %109 = arith.select %107, %108, %87 : vector<8x1xi1>, vector<8x1xf32>
    %cst_36 = arith.constant dense<0xFF800000> : vector<1xf32>
    %110 = vector.multi_reduction <maximumf>, %109, %cst_36 [0] : vector<8x1xf32> to vector<1xf32>
    %111 = vector.shape_cast %110 : vector<1xf32> to vector<1x1xf32>
    %112 = vector.broadcast %111 : vector<1x1xf32> to vector<8x1xf32>
    %113 = arith.cmpf oge, %109, %112 : vector<8x1xf32>
    %cst_37 = arith.constant 8.000000e+00 : f32
    %114 = vector.broadcast %cst_37 : f32 to vector<8x1xf32>
    %115 = arith.select %113, %35, %114 : vector<8x1xi1>, vector<8x1xf32>
    %cst_38 = arith.constant dense<0x7F800000> : vector<1xf32>
    %116 = vector.multi_reduction <minimumf>, %115, %cst_38 [0] : vector<8x1xf32> to vector<1xf32>
    %117 = vector.shape_cast %116 : vector<1xf32> to vector<1x1xf32>
    %118 = vector.broadcast %117 : vector<1x1xf32> to vector<8x1xf32>
    %119 = arith.cmpf oeq, %35, %118 : vector<8x1xf32>
    %120 = arith.extui %119 : vector<8x1xi1> to vector<8x1xi32>
    %121 = arith.sitofp %120 : vector<8x1xi32> to vector<8x1xf32>
    %122 = arith.addf %100, %121 : vector<8x1xf32>
    %123 = vector.broadcast %117 : vector<1x1xf32> to vector<1x8xf32>
    %124 = arith.cmpf oeq, %37, %123 : vector<1x8xf32>
    %125 = arith.extui %124 : vector<1x8xi1> to vector<1x8xi32>
    %126 = arith.sitofp %125 : vector<1x8xi32> to vector<1x8xf32>
    %127 = arith.addf %105, %126 : vector<1x8xf32>
    %128 = vector.broadcast %32 : vector<8x1xf32> to vector<8x128xf32>
    %129 = arith.mulf %25, %128 : vector<8x128xf32>
    %130 = vector.broadcast %122 : vector<8x1xf32> to vector<8x128xf32>
    %131 = arith.mulf %129, %130 : vector<8x128xf32>
    %132 = vector.broadcast %122 : vector<8x1xf32> to vector<8x8xf32>
    %133 = vector.broadcast %127 : vector<1x8xf32> to vector<8x8xf32>
    %134 = arith.mulf %132, %133 : vector<8x8xf32>
    %135 = arith.mulf %1, %134 : vector<8x8xf32>
    %136 = arith.addf %135, %9 : vector<8x8xf32>
    %c0_39 = arith.constant 0 : index
    %c0_40 = arith.constant 0 : index
    %137 = vector.load %arg5[%c0_39, %c0_40] : memref<128x128xf32, #tpu.memory_space<vmem>>, vector<128x128xf32>
    %c0_41 = arith.constant 0 : index
    %c0_42 = arith.constant 0 : index
    %138 = vector.load %arg6[%c0_41, %c0_42] : memref<1x128xf32, #tpu.memory_space<vmem>>, vector<1x128xf32>
    %cst_43 = arith.constant dense<0.000000e+00> : vector<8xf32>
    %139 = vector.multi_reduction <add>, %136, %cst_43 [1] : vector<8x8xf32> to vector<8xf32>
    %140 = vector.shape_cast %139 : vector<8xf32> to vector<8x1xf32>
    %141 = math.rsqrt %140 : vector<8x1xf32>
    %cst_44 = arith.constant dense<0.000000e+00> : vector<8x128xf32>
    %142 = tpu.matmul %131, %137, %cst_44 {dimension_numbers = #tpu.dot_dimension_numbers<[1], [0], [0], [1], [0, 0, 1, 1], [], []>} : vector<8x128xf32>, vector<128x128xf32>, vector<8x128xf32> -> vector<8x128xf32>
    %143 = vector.broadcast %141 : vector<8x1xf32> to vector<8x128xf32>
    %144 = arith.mulf %143, %142 : vector<8x128xf32>
    %cst_45 = arith.constant dense<0.000000e+00> : vector<8x128xf32>
    %145 = tpu.matmul %136, %144, %cst_45 {dimension_numbers = #tpu.dot_dimension_numbers<[1], [0], [0], [1], [0, 0, 1, 1], [], []>} : vector<8x8xf32>, vector<8x128xf32>, vector<8x128xf32> -> vector<8x128xf32>
    %146 = vector.broadcast %141 : vector<8x1xf32> to vector<8x128xf32>
    %147 = arith.mulf %146, %145 : vector<8x128xf32>
    %148 = vector.broadcast %138 : vector<1x128xf32> to vector<8x128xf32>
    %149 = arith.addf %147, %148 : vector<8x128xf32>
    %cst_46 = arith.constant 0.000000e+00 : f32
    %150 = vector.broadcast %cst_46 : f32 to vector<8x128xf32>
    %151 = arith.maximumf %149, %150 : vector<8x128xf32>
    %152 = vector.broadcast %122 : vector<8x1xf32> to vector<8x128xf32>
    %153 = arith.mulf %151, %152 : vector<8x128xf32>
    %cst_47 = arith.constant dense<0.000000e+00> : vector<128xf32>
    %154 = vector.multi_reduction <add>, %153, %cst_47 [0] : vector<8x128xf32> to vector<128xf32>
    %155 = vector.shape_cast %154 : vector<128xf32> to vector<1x128xf32>
    %156 = vector.broadcast %4 : vector<1x128xf32> to vector<8x128xf32>
    %157 = arith.mulf %153, %156 : vector<8x128xf32>
    %cst_48 = arith.constant dense<0.000000e+00> : vector<8xf32>
    %158 = vector.multi_reduction <add>, %157, %cst_48 [1] : vector<8x128xf32> to vector<8xf32>
    %159 = vector.shape_cast %158 : vector<8xf32> to vector<8x1xf32>
    %160 = math.tanh %159 : vector<8x1xf32>
    %161 = tpu.iota {dimensions = array<i32: 0>} : vector<8x1xi32>
    %162 = arith.sitofp %161 : vector<8x1xi32> to vector<8x1xf32>
    %163 = tpu.iota {dimensions = array<i32: 1>} : vector<1x8xi32>
    %164 = arith.sitofp %163 : vector<1x8xi32> to vector<1x8xf32>
    %cst_49 = arith.constant 0.000000e+00 : f32
    %165 = vector.broadcast %cst_49 : f32 to vector<8x1xf32>
    %166 = arith.cmpf ogt, %122, %165 : vector<8x1xf32>
    %cst_50 = arith.constant -1.000000e+30 : f32
    %167 = vector.broadcast %cst_50 : f32 to vector<8x1xf32>
    %168 = arith.select %166, %160, %167 : vector<8x1xi1>, vector<8x1xf32>
    %cst_51 = arith.constant 0.000000e+00 : f32
    %169 = vector.broadcast %cst_51 : f32 to vector<8x1xf32>
    %cst_52 = arith.constant 0.000000e+00 : f32
    %170 = vector.broadcast %cst_52 : f32 to vector<1x8xf32>
    %cst_53 = arith.constant dense<0xFF800000> : vector<1xf32>
    %171 = vector.multi_reduction <maximumf>, %168, %cst_53 [0] : vector<8x1xf32> to vector<1xf32>
    %172 = vector.shape_cast %171 : vector<1xf32> to vector<1x1xf32>
    %173 = vector.broadcast %172 : vector<1x1xf32> to vector<8x1xf32>
    %174 = arith.cmpf oge, %168, %173 : vector<8x1xf32>
    %cst_54 = arith.constant 8.000000e+00 : f32
    %175 = vector.broadcast %cst_54 : f32 to vector<8x1xf32>
    %176 = arith.select %174, %162, %175 : vector<8x1xi1>, vector<8x1xf32>
    %cst_55 = arith.constant dense<0x7F800000> : vector<1xf32>
    %177 = vector.multi_reduction <minimumf>, %176, %cst_55 [0] : vector<8x1xf32> to vector<1xf32>
    %178 = vector.shape_cast %177 : vector<1xf32> to vector<1x1xf32>
    %179 = vector.broadcast %178 : vector<1x1xf32> to vector<8x1xf32>
    %180 = arith.cmpf oeq, %162, %179 : vector<8x1xf32>
    %181 = arith.extui %180 : vector<8x1xi1> to vector<8x1xi32>
    %182 = arith.sitofp %181 : vector<8x1xi32> to vector<8x1xf32>
    %183 = arith.addf %169, %182 : vector<8x1xf32>
    %184 = vector.broadcast %178 : vector<1x1xf32> to vector<1x8xf32>
    %185 = arith.cmpf oeq, %164, %184 : vector<1x8xf32>
    %186 = arith.extui %185 : vector<1x8xi1> to vector<1x8xi32>
    %187 = arith.sitofp %186 : vector<1x8xi32> to vector<1x8xf32>
    %188 = arith.addf %170, %187 : vector<1x8xf32>
    %cst_56 = arith.constant 0.000000e+00 : f32
    %189 = vector.broadcast %cst_56 : f32 to vector<8x1xf32>
    %190 = arith.cmpf ogt, %182, %189 : vector<8x1xf32>
    %cst_57 = arith.constant -1.000000e+30 : f32
    %191 = vector.broadcast %cst_57 : f32 to vector<8x1xf32>
    %192 = arith.select %190, %191, %168 : vector<8x1xi1>, vector<8x1xf32>
    %cst_58 = arith.constant dense<0xFF800000> : vector<1xf32>
    %193 = vector.multi_reduction <maximumf>, %192, %cst_58 [0] : vector<8x1xf32> to vector<1xf32>
    %194 = vector.shape_cast %193 : vector<1xf32> to vector<1x1xf32>
    %195 = vector.broadcast %194 : vector<1x1xf32> to vector<8x1xf32>
    %196 = arith.cmpf oge, %192, %195 : vector<8x1xf32>
    %cst_59 = arith.constant 8.000000e+00 : f32
    %197 = vector.broadcast %cst_59 : f32 to vector<8x1xf32>
    %198 = arith.select %196, %162, %197 : vector<8x1xi1>, vector<8x1xf32>
    %cst_60 = arith.constant dense<0x7F800000> : vector<1xf32>
    %199 = vector.multi_reduction <minimumf>, %198, %cst_60 [0] : vector<8x1xf32> to vector<1xf32>
    %200 = vector.shape_cast %199 : vector<1xf32> to vector<1x1xf32>
    %201 = vector.broadcast %200 : vector<1x1xf32> to vector<8x1xf32>
    %202 = arith.cmpf oeq, %162, %201 : vector<8x1xf32>
    %203 = arith.extui %202 : vector<8x1xi1> to vector<8x1xi32>
    %204 = arith.sitofp %203 : vector<8x1xi32> to vector<8x1xf32>
    %205 = arith.addf %183, %204 : vector<8x1xf32>
    %206 = vector.broadcast %200 : vector<1x1xf32> to vector<1x8xf32>
    %207 = arith.cmpf oeq, %164, %206 : vector<1x8xf32>
    %208 = arith.extui %207 : vector<1x8xi1> to vector<1x8xi32>
    %209 = arith.sitofp %208 : vector<1x8xi32> to vector<1x8xf32>
    %210 = arith.addf %188, %209 : vector<1x8xf32>
    %211 = vector.broadcast %160 : vector<8x1xf32> to vector<8x128xf32>
    %212 = arith.mulf %153, %211 : vector<8x128xf32>
    %213 = vector.broadcast %205 : vector<8x1xf32> to vector<8x128xf32>
    %214 = arith.mulf %212, %213 : vector<8x128xf32>
    %215 = vector.broadcast %205 : vector<8x1xf32> to vector<8x8xf32>
    %216 = vector.broadcast %210 : vector<1x8xf32> to vector<8x8xf32>
    %217 = arith.mulf %215, %216 : vector<8x8xf32>
    %218 = arith.mulf %1, %217 : vector<8x8xf32>
    %219 = arith.addf %218, %9 : vector<8x8xf32>
    %c0_61 = arith.constant 0 : index
    %c0_62 = arith.constant 0 : index
    %220 = vector.load %arg7[%c0_61, %c0_62] : memref<128x128xf32, #tpu.memory_space<vmem>>, vector<128x128xf32>
    %c0_63 = arith.constant 0 : index
    %c0_64 = arith.constant 0 : index
    %221 = vector.load %arg8[%c0_63, %c0_64] : memref<1x128xf32, #tpu.memory_space<vmem>>, vector<1x128xf32>
    %cst_65 = arith.constant dense<0.000000e+00> : vector<8xf32>
    %222 = vector.multi_reduction <add>, %219, %cst_65 [1] : vector<8x8xf32> to vector<8xf32>
    %223 = vector.shape_cast %222 : vector<8xf32> to vector<8x1xf32>
    %224 = math.rsqrt %223 : vector<8x1xf32>
    %cst_66 = arith.constant dense<0.000000e+00> : vector<8x128xf32>
    %225 = tpu.matmul %214, %220, %cst_66 {dimension_numbers = #tpu.dot_dimension_numbers<[1], [0], [0], [1], [0, 0, 1, 1], [], []>} : vector<8x128xf32>, vector<128x128xf32>, vector<8x128xf32> -> vector<8x128xf32>
    %226 = vector.broadcast %224 : vector<8x1xf32> to vector<8x128xf32>
    %227 = arith.mulf %226, %225 : vector<8x128xf32>
    %cst_67 = arith.constant dense<0.000000e+00> : vector<8x128xf32>
    %228 = tpu.matmul %219, %227, %cst_67 {dimension_numbers = #tpu.dot_dimension_numbers<[1], [0], [0], [1], [0, 0, 1, 1], [], []>} : vector<8x8xf32>, vector<8x128xf32>, vector<8x128xf32> -> vector<8x128xf32>
    %229 = vector.broadcast %224 : vector<8x1xf32> to vector<8x128xf32>
    %230 = arith.mulf %229, %228 : vector<8x128xf32>
    %231 = vector.broadcast %221 : vector<1x128xf32> to vector<8x128xf32>
    %232 = arith.addf %230, %231 : vector<8x128xf32>
    %cst_68 = arith.constant 0.000000e+00 : f32
    %233 = vector.broadcast %cst_68 : f32 to vector<8x128xf32>
    %234 = arith.maximumf %232, %233 : vector<8x128xf32>
    %235 = vector.broadcast %205 : vector<8x1xf32> to vector<8x128xf32>
    %236 = arith.mulf %234, %235 : vector<8x128xf32>
    %cst_69 = arith.constant dense<0.000000e+00> : vector<128xf32>
    %237 = vector.multi_reduction <add>, %236, %cst_69 [0] : vector<8x128xf32> to vector<128xf32>
    %238 = vector.shape_cast %237 : vector<128xf32> to vector<1x128xf32>
    %c0_70 = arith.constant 0 : index
    %c0_71 = arith.constant 0 : index
    %239 = vector.load %arg10[%c0_70, %c0_71] : memref<128x128xf32, #tpu.memory_space<vmem>>, vector<128x128xf32>
    %cst_72 = arith.constant dense<0.000000e+00> : vector<1x128xf32>
    %240 = tpu.matmul %27, %239, %cst_72 {dimension_numbers = #tpu.dot_dimension_numbers<[1], [0], [0], [1], [0, 0, 1, 1], [], []>} : vector<1x128xf32>, vector<128x128xf32>, vector<1x128xf32> -> vector<1x128xf32>
    %c0_73 = arith.constant 0 : index
    %c0_74 = arith.constant 0 : index
    %241 = vector.load %arg11[%c0_73, %c0_74] : memref<128x128xf32, #tpu.memory_space<vmem>>, vector<128x128xf32>
    %cst_75 = arith.constant dense<0.000000e+00> : vector<1x128xf32>
    %242 = tpu.matmul %155, %241, %cst_75 {dimension_numbers = #tpu.dot_dimension_numbers<[1], [0], [0], [1], [0, 0, 1, 1], [], []>} : vector<1x128xf32>, vector<128x128xf32>, vector<1x128xf32> -> vector<1x128xf32>
    %243 = arith.addf %240, %242 : vector<1x128xf32>
    %c0_76 = arith.constant 0 : index
    %c0_77 = arith.constant 0 : index
    %244 = vector.load %arg12[%c0_76, %c0_77] : memref<128x128xf32, #tpu.memory_space<vmem>>, vector<128x128xf32>
    %cst_78 = arith.constant dense<0.000000e+00> : vector<1x128xf32>
    %245 = tpu.matmul %238, %244, %cst_78 {dimension_numbers = #tpu.dot_dimension_numbers<[1], [0], [0], [1], [0, 0, 1, 1], [], []>} : vector<1x128xf32>, vector<128x128xf32>, vector<1x128xf32> -> vector<1x128xf32>
    %246 = arith.addf %243, %245 : vector<1x128xf32>
    %c0_79 = arith.constant 0 : index
    %c0_80 = arith.constant 0 : index
    %247 = vector.load %arg13[%c0_79, %c0_80] : memref<1x128xf32, #tpu.memory_space<vmem>>, vector<1x128xf32>
    %248 = arith.addf %246, %247 : vector<1x128xf32>
    %cst_81 = arith.constant 0.000000e+00 : f32
    %249 = vector.broadcast %cst_81 : f32 to vector<1x128xf32>
    %250 = arith.maximumf %248, %249 : vector<1x128xf32>
    %c0_82 = arith.constant 0 : index
    %c0_83 = arith.constant 0 : index
    %251 = vector.load %arg14[%c0_82, %c0_83] : memref<128x128xf32, #tpu.memory_space<vmem>>, vector<128x128xf32>
    %cst_84 = arith.constant dense<0.000000e+00> : vector<1x128xf32>
    %252 = tpu.matmul %250, %251, %cst_84 {dimension_numbers = #tpu.dot_dimension_numbers<[1], [0], [0], [1], [0, 0, 1, 1], [], []>} : vector<1x128xf32>, vector<128x128xf32>, vector<1x128xf32> -> vector<1x128xf32>
    %c0_85 = arith.constant 0 : index
    %c0_86 = arith.constant 0 : index
    %253 = vector.load %arg15[%c0_85, %c0_86] : memref<1x128xf32, #tpu.memory_space<vmem>>, vector<1x128xf32>
    %254 = arith.addf %252, %253 : vector<1x128xf32>
    %cst_87 = arith.constant 0.000000e+00 : f32
    %255 = vector.broadcast %cst_87 : f32 to vector<1x128xf32>
    %256 = arith.maximumf %254, %255 : vector<1x128xf32>
    %c0_88 = arith.constant 0 : index
    %c0_89 = arith.constant 0 : index
    %257 = vector.load %arg16[%c0_88, %c0_89] : memref<1x128xf32, #tpu.memory_space<vmem>>, vector<1x128xf32>
    %258 = arith.mulf %256, %257 : vector<1x128xf32>
    %cst_90 = arith.constant dense<0.000000e+00> : vector<1xf32>
    %259 = vector.multi_reduction <add>, %258, %cst_90 [1] : vector<1x128xf32> to vector<1xf32>
    %260 = vector.shape_cast %259 : vector<1xf32> to vector<1x1xf32>
    %c0_91 = arith.constant 0 : index
    %c0_92 = arith.constant 0 : index
    %261 = vector.load %arg17[%c0_91, %c0_92] : memref<1x1xf32, #tpu.memory_space<vmem>>, vector<1x1xf32>
    %262 = arith.addf %260, %261 : vector<1x1xf32>
    %cst_93 = arith.constant 0.000000e+00 : f32
    %263 = vector.broadcast %cst_93 : f32 to vector<1x1xf32>
    %264 = arith.subf %263, %262 : vector<1x1xf32>
    %265 = math.exp %264 : vector<1x1xf32>
    %cst_94 = arith.constant 1.000000e+00 : f32
    %266 = vector.broadcast %cst_94 : f32 to vector<1x1xf32>
    %267 = arith.addf %266, %265 : vector<1x1xf32>
    %268 = tpu.reciprocal %267 {approx = true} : vector<1x1xf32> -> vector<1x1xf32>
    %269 = vector.shape_cast %268 : vector<1x1xf32> to vector<1x1xf32>
    %270 = vector.broadcast %269 : vector<1x1xf32> to vector<1x128xf32>
    %c0_95 = arith.constant 0 : index
    %c0_96 = arith.constant 0 : index
    %c0_97 = arith.constant 0 : index
    %271 = vector.load %arg18[%c0_95, %c0_96, %c0_97] : memref<1x1x128xf32, #tpu.memory_space<vmem>>, vector<1x1x128xf32>
    %272 = vector.shape_cast %271 : vector<1x1x128xf32> to vector<1x128xf32>
    %273 = vector.shape_cast %270 : vector<1x128xf32> to vector<1x1x128xf32>
    tpu.vector_store %arg18[%c0_95, %c0_96, %c0_97], %273 {strides = array<i32>} : memref<1x1x128xf32, #tpu.memory_space<vmem>>, vector<1x1x128xf32>,
    return
  }
  func.func @transform_0(%arg0: i32) -> (i32, i32, i32) {
    %c0_i32 = arith.constant 0 : i32
    %c0_i32_0 = arith.constant 0 : i32
    %c0_i32_1 = arith.constant 0 : i32
    return %arg0, %c0_i32, %c0_i32_0 : i32, i32, i32
  }
  func.func @transform_1(%arg0: i32) -> (i32, i32, i32) {
    %c0_i32 = arith.constant 0 : i32
    %c0_i32_0 = arith.constant 0 : i32
    %c0_i32_1 = arith.constant 0 : i32
    return %arg0, %c0_i32, %c0_i32_0 : i32, i32, i32
  }
  func.func @transform_2(%arg0: i32) -> (i32, i32) {
    %c0_i32 = arith.constant 0 : i32
    %c0_i32_0 = arith.constant 0 : i32
    %c0_i32_1 = arith.constant 0 : i32
    return %c0_i32, %c0_i32_0 : i32, i32
  }
  func.func @transform_3(%arg0: i32) -> (i32, i32) {
    %c0_i32 = arith.constant 0 : i32
    %c0_i32_0 = arith.constant 0 : i32
    %c0_i32_1 = arith.constant 0 : i32
    return %c0_i32, %c0_i32_0 : i32, i32
  }
  func.func @transform_4(%arg0: i32) -> (i32, i32) {
    %c0_i32 = arith.constant 0 : i32
    %c0_i32_0 = arith.constant 0 : i32
    %c0_i32_1 = arith.constant 0 : i32
    return %c0_i32, %c0_i32_0 : i32, i32
  }
  func.func @transform_5(%arg0: i32) -> (i32, i32) {
    %c0_i32 = arith.constant 0 : i32
    %c0_i32_0 = arith.constant 0 : i32
    %c0_i32_1 = arith.constant 0 : i32
    return %c0_i32, %c0_i32_0 : i32, i32
  }
  func.func @transform_6(%arg0: i32) -> (i32, i32) {
    %c0_i32 = arith.constant 0 : i32
    %c0_i32_0 = arith.constant 0 : i32
    %c0_i32_1 = arith.constant 0 : i32
    return %c0_i32, %c0_i32_0 : i32, i32
  }
  func.func @transform_7(%arg0: i32) -> (i32, i32) {
    %c0_i32 = arith.constant 0 : i32
    %c0_i32_0 = arith.constant 0 : i32
    %c0_i32_1 = arith.constant 0 : i32
    return %c0_i32, %c0_i32_0 : i32, i32
  }
  func.func @transform_8(%arg0: i32) -> (i32, i32) {
    %c0_i32 = arith.constant 0 : i32
    %c0_i32_0 = arith.constant 0 : i32
    %c0_i32_1 = arith.constant 0 : i32
    return %c0_i32, %c0_i32_0 : i32, i32
  }
  func.func @transform_9(%arg0: i32) -> (i32, i32) {
    %c0_i32 = arith.constant 0 : i32
    %c0_i32_0 = arith.constant 0 : i32
    %c0_i32_1 = arith.constant 0 : i32
    return %c0_i32, %c0_i32_0 : i32, i32
  }
  func.func @transform_10(%arg0: i32) -> (i32, i32) {
    %c0_i32 = arith.constant 0 : i32
    %c0_i32_0 = arith.constant 0 : i32
    %c0_i32_1 = arith.constant 0 : i32
    return %c0_i32, %c0_i32_0 : i32, i32
  }
  func.func @transform_11(%arg0: i32) -> (i32, i32) {
    %c0_i32 = arith.constant 0 : i32
    %c0_i32_0 = arith.constant 0 : i32
    %c0_i32_1 = arith.constant 0 : i32
    return %c0_i32, %c0_i32_0 : i32, i32
  }
  func.func @transform_12(%arg0: i32) -> (i32, i32) {
    %c0_i32 = arith.constant 0 : i32
    %c0_i32_0 = arith.constant 0 : i32
    %c0_i32_1 = arith.constant 0 : i32
    return %c0_i32, %c0_i32_0 : i32, i32
  }
  func.func @transform_13(%arg0: i32) -> (i32, i32) {
    %c0_i32 = arith.constant 0 : i32
    %c0_i32_0 = arith.constant 0 : i32
    %c0_i32_1 = arith.constant 0 : i32
    return %c0_i32, %c0_i32_0 : i32, i32
  }
  func.func @transform_14(%arg0: i32) -> (i32, i32) {
    %c0_i32 = arith.constant 0 : i32
    %c0_i32_0 = arith.constant 0 : i32
    %c0_i32_1 = arith.constant 0 : i32
    return %c0_i32, %c0_i32_0 : i32, i32
  }
  func.func @transform_15(%arg0: i32) -> (i32, i32) {
    %c0_i32 = arith.constant 0 : i32
    %c0_i32_0 = arith.constant 0 : i32
    %c0_i32_1 = arith.constant 0 : i32
    return %c0_i32, %c0_i32_0 : i32, i32
  }
  func.func @transform_16(%arg0: i32) -> (i32, i32) {
    %c0_i32 = arith.constant 0 : i32
    %c0_i32_0 = arith.constant 0 : i32
    %c0_i32_1 = arith.constant 0 : i32
    return %c0_i32, %c0_i32_0 : i32, i32
  }
  func.func @transform_17(%arg0: i32) -> (i32, i32, i32) {
    %c0_i32 = arith.constant 0 : i32
    %c0_i32_0 = arith.constant 0 : i32
    %c0_i32_1 = arith.constant 0 : i32
    return %arg0, %c0_i32, %c0_i32_0 : i32, i32, i32
  }
}

</mosaic_0001>

<bundles_post_ra>
// kernel: gcn_pallas_forward.1
= control target key start
LH: loop header
LB: loop body
LE: loop exit
PB: predicated region body
PF: predicated region fallthrough
CT: control target
= control target key end

     0   :  { %s3346_s0 = inlined_call_operand.vmem [shape: f32[2,8,8], index: 0, kind: input, shape index: {}]   ;;  %s3347_s1 = inlined_call_operand.vmem [shape: f32[2,8,128], index: 1, kind: input, shape index: {}]   ;;  %s3348_s2 = inlined_call_operand.hbm [shape: f32[128,128], index: 2, kind: input, shape index: {}]   ;;  %s3349_s3 = inlined_call_operand.vmem [shape: f32[1,128], index: 3, kind: input, shape index: {}]   ;;  %s3350_s4 = inlined_call_operand.hbm [shape: f32[128,128], index: 4, kind: input, shape index: {}]   ;;  %s3351_s5 = inlined_call_operand.vmem [shape: f32[1,128], index: 5, kind: input, shape index: {}]   ;;  %s3352_s6 = inlined_call_operand.hbm [shape: f32[128,128], index: 6, kind: input, shape index: {}]   ;;  %s3353_s7 = inlined_call_operand.vmem [shape: f32[1,128], index: 7, kind: input, shape index: {}]   ;;  %s3354_s8 = inlined_call_operand.vmem [shape: f32[1,128], index: 8, kind: input, shape index: {}]   ;;  %s3355_s9 = inlined_call_operand.hbm [shape: f32[128,128], index: 9, kind: input, shape index: {}]   ;;  %s3356_s10 = inlined_call_operand.hbm [shape: f32[128,128], index: 10, kind: input, shape index: {}]   ;;  %s3357_s11 = inlined_call_operand.hbm [shape: f32[128,128], index: 11, kind: input, shape index: {}]   ;;  %s3358_s12 = inlined_call_operand.vmem [shape: f32[1,128], index: 12, kind: input, shape index: {}]   ;;  %s3359_s13 = inlined_call_operand.hbm [shape: f32[128,128], index: 13, kind: input, shape index: {}]   ;;  %s3360_s14 = inlined_call_operand.vmem [shape: f32[1,128], index: 14, kind: input, shape index: {}]   ;;  %s3361_s15 = inlined_call_operand.vmem [shape: f32[1,128], index: 15, kind: input, shape index: {}]   ;;  %s3362_s16 = inlined_call_operand.<no memory space> [shape: f32[1,1], index: 16, kind: input, shape index: {}]   ;;  %s3363_s17 = inlined_call_operand.vmem [shape: f32[2,1,128], index: 17, kind: output, shape index: {}]  }
   0x1   :  { %3367 = sst [smem:[#allocation19_spill]] %s3346_s0  ;;  %v22_v0 = vstv %s3362_s16 }
   0x2   :  { %3368 = sst [smem:[#allocation20_spill]] %s3347_s1  ;;  %23 = vst [vmem:[#allocation2] sm:$0x1] %v22_v0 }
   0x3   :  { %3369 = sst [smem:[#allocation21_spill]] %s3360_s14 }
   0x4   :  { %3370 = sst [smem:[#allocation22_spill]] %s3361_s15 }
   0x5   :  { %3371 = sst [smem:[#allocation23_spill]] %s3363_s17 }
   0x6   :  { %24 = vsyncpa [#allocation4], 0 }
   0x7   :  { %25 = vsyncpa [#allocation6], 0 }
   0x8   :  { %26 = vsyncpa [#allocation9], 0 }
   0x9   :  { %27 = vsyncpa [#allocation12], 0  ;;  %s2906_s26 = smov 0  }
   0xa LB: > { %3372 = sst [smem:[#allocation18_spill]] %s2798_s26  ;;  %s2912_s27 = sadd.s32 4294967295, %s2798_s26   ;;  %s2798_s26 = sphi %s2906_s26, %s33_s26  }
   0xb   : > { %p1886_p0 = scmp.ge.s32.totalorder %s2798_s26, 1  ;;  %p431_p1 = scmp.lt.s32.totalorder %s2798_s26, 3 }
   0xc   : > { %p3365_p2 = scmp.eq.s32.totalorder %s2912_s27, 0  ;;  %s2800_s28 = smov [#allocation5]  }
   0xd   : > { %p2917_p3 = pnand %p1886_p0, %p431_p1  ;;  %s459_s29 = sshll.u32 %s2800_s28, 4  ;;  %s2921_s29 = int_to_ptr.vmem [resolvable:$true] %s459_s29 }
   0xe   : > { %s2801_s0 = smov [#allocation8]   ;;  %s2802_s19 = smov [#allocation11]  }
   0xf   : > { %s3373_s16 = scalar_select %p2917_p3, 1, 0 }
  0x10   : > { %p2508_p4 = pneg %p2917_p3  ;;  %s494_s30 = sshll.u32 %s2801_s0, 4  ;;  %s2925_s30 = int_to_ptr.vmem [resolvable:$true] %s494_s30 }
  0x11   : > { %s520_s1 = sshll.u32 %s2802_s19, 4  ;;  %s2803_s20 = smov [#allocation3]   ;;  %s2933_s1 = int_to_ptr.vmem [resolvable:$true] %s520_s1 }
  0x12   : > { %p2929_p5 = pnand %p3365_p2, %p2508_p4  ;;  %s2935_s21 = sshll.u32 %s2803_s20, 4  ;;  %s444_s21 = int_to_ptr.vmem [resolvable:$true] %s2935_s21 }
  0x13   : > { %s2580_s24 = scalar_lea.hbm %s3350_s4, 2048 }
  0x14   : > { %p2581_p6 = scmp.ne.s32.totalorder %s3350_s4, %s2580_s24  ;;  %p2945_p7 = pneg %p2929_p5 }
  0x15   : > { %p2587_p10 = scmp.lt.u32.totalorder %s2580_s24, %s3350_s4 }
  0x16   : > { %p2583_p8 = pnand %p2945_p7, %p2581_p6 }
  0x18   : > { %p2584_p9 = pneg %p2583_p8 }
  0x1a   : > { %p2589_p11 = pnand %p2587_p10, %p2584_p9 }
  0x1c   : > { %2592 = shalt.err (!%p2589_p11)
}
  0x1d   : > { %s2593_s22 = scalar_lea.vmem %s2921_s29, 2048  ;;  %p2601_p1 = scmp.lt.s32.totalorder %s2921_s29, %s2921_s29 }
  0x1e   : > { %p2594_p12 = scmp.ne.s32.totalorder %s2921_s29, %s2593_s22  ;;  %p2602_p4 = scmp.lt.s32.totalorder %s2593_s22, %s2593_s22 }
  0x20   : > { %p2596_p13 = pnand %p2594_p12, %p2945_p7  ;;  %p2603_p6 = por %p2602_p4, %p2601_p1 }
  0x22   : > { %p2597_p0 = pneg %p2596_p13 }
  0x24   : > { %p2604_p8 = pnand %p2603_p6, %p2597_p0 }
  0x26   : > { %2607 = shalt.err (!%p2604_p8)
}
  0x27   : > { %s2804_s23 = smov 128   ;;  %s2805_s24 = smov 8  }
  0x28   : > { %2514 = dma.hbm_to_vmem [thread:$0]  (!%p2929_p5), %s3350_s4, 2048, %s2921_s29, [#allocation6], %s2804_s23, %s2804_s23, %s2805_s24  }
  0x29   : > { %s2608_s22 = scalar_lea.hbm %s3355_s9, 2048 }
  0x2a   : > { %p2609_p9 = scmp.ne.s32.totalorder %s3355_s9, %s2608_s22  ;;  %p2615_p12 = scmp.lt.u32.totalorder %s2608_s22, %s3355_s9 }
  0x2c   : > { %p2611_p10 = pnand %p2609_p9, %p2945_p7 }
  0x2e   : > { %p2612_p11 = pneg %p2611_p10 }
  0x30   : > { %p2617_p13 = pnand %p2615_p12, %p2612_p11 }
  0x32   : > { %2620 = shalt.err (!%p2617_p13)
}
  0x33   : > { %s2621_s29 = scalar_lea.vmem %s2925_s30, 2048  ;;  %p2629_p6 = scmp.lt.s32.totalorder %s2925_s30, %s2925_s30 }
  0x34   : > { %p2622_p0 = scmp.ne.s32.totalorder %s2925_s30, %s2621_s29  ;;  %p2630_p8 = scmp.lt.s32.totalorder %s2621_s29, %s2621_s29 }
  0x36   : > { %p2624_p1 = pnand %p2622_p0, %p2945_p7  ;;  %p2631_p9 = por %p2630_p8, %p2629_p6 }
  0x38   : > { %p2625_p4 = pneg %p2624_p1 }
  0x3a   : > { %p2632_p10 = pnand %p2631_p9, %p2625_p4 }
  0x3c   : > { %2635 = shalt.err (!%p2632_p10)
}
  0x3d   : > { %2520 = dma.hbm_to_vmem [thread:$0]  (!%p2929_p5), %s3355_s9, 2048, %s2925_s30, [#allocation9], %s2804_s23, %s2804_s23, %s2805_s24  }
  0x3e   : > { %s2636_s25 = scalar_lea.hbm %s3357_s11, 2048 }
  0x3f   : > { %p2637_p11 = scmp.ne.s32.totalorder %s3357_s11, %s2636_s25  ;;  %p2643_p0 = scmp.lt.u32.totalorder %s2636_s25, %s3357_s11 }
  0x41   : > { %p2639_p12 = pnand %p2637_p11, %p2945_p7 }
  0x43   : > { %p2640_p13 = pneg %p2639_p12 }
  0x45   : > { %p2645_p1 = pnand %p2643_p0, %p2640_p13 }
  0x47   : > { %2648 = shalt.err (!%p2645_p1)
}
  0x48   : > { %s2649_s30 = scalar_lea.vmem %s2933_s1, 2048  ;;  %p2657_p9 = scmp.lt.s32.totalorder %s2933_s1, %s2933_s1 }
  0x49   : > { %p2650_p4 = scmp.ne.s32.totalorder %s2933_s1, %s2649_s30  ;;  %p2658_p10 = scmp.lt.s32.totalorder %s2649_s30, %s2649_s30 }
  0x4b   : > { %p2652_p6 = pnand %p2650_p4, %p2945_p7  ;;  %p2659_p11 = por %p2658_p10, %p2657_p9 }
  0x4d   : > { %p2653_p8 = pneg %p2652_p6 }
  0x4f   : > { %p2660_p12 = pnand %p2659_p11, %p2653_p8 }
  0x51   : > { %2663 = shalt.err (!%p2660_p12)
}
  0x52   : > { %2526 = dma.hbm_to_vmem [thread:$0]  (!%p2929_p5), %s3357_s11, 2048, %s2933_s1, [#allocation12], %s2804_s23, %s2804_s23, %s2805_s24  }
  0x53   : > { %s2664_s26 = scalar_lea.hbm %s3348_s2, 2048 }
  0x54   : > { %p2665_p13 = scmp.ne.s32.totalorder %s3348_s2, %s2664_s26  ;;  %p2671_p4 = scmp.lt.u32.totalorder %s2664_s26, %s3348_s2 }
  0x56   : > { %p2667_p0 = pnand %p2665_p13, %p2945_p7 }
  0x58   : > { %p2668_p1 = pneg %p2667_p0 }
  0x5a   : > { %p2673_p6 = pnand %p2671_p4, %p2668_p1 }
  0x5c   : > { %2676 = shalt.err (!%p2673_p6)
}
  0x5d   : > { %s2677_s22 = scalar_lea.vmem %s444_s21, 2048  ;;  %p2685_p11 = scmp.lt.s32.totalorder %s444_s21, %s444_s21 }
  0x5e   : > { %p2678_p8 = scmp.ne.s32.totalorder %s444_s21, %s2677_s22  ;;  %p2686_p12 = scmp.lt.s32.totalorder %s2677_s22, %s2677_s22 }
  0x60   : > { %p2680_p9 = pnand %p2678_p8, %p2945_p7  ;;  %p2687_p2 = por %p2686_p12, %p2685_p11 }
  0x62   : > { %p2681_p10 = pneg %p2680_p9 }
  0x64   : > { %p2688_p3 = pnand %p2687_p2, %p2681_p10 }
  0x66   : > { %2691 = shalt.err (!%p2688_p3)
}
  0x67   : > { %2511 = dma.hbm_to_vmem [thread:$0]  (!%p2929_p5), %s3348_s2, 2048, %s444_s21, [#allocation4], %s2804_s23, %s2804_s23, %s2805_s24  }
  0x68   : > { %s2806_s29 = smov [#allocation7]   ;;  %s2807_s15 = smov [#allocation10]  }
  0x69   : > { %s475_s14 = sshll.u32 %s2806_s29, 4  ;;  %s507_s17 = sshll.u32 %s2807_s15, 4  ;;  %s476_s14 = int_to_ptr.vmem [resolvable:$true] %s475_s14  ;;  %s508_s17 = int_to_ptr.vmem [resolvable:$true] %s507_s17 }
  0x6a   : > { %s2692_s28 = scalar_lea.hbm %s3352_s6, 2048 }
  0x6b   : > { %p2693_p2 = scmp.ne.s32.totalorder %s3352_s6, %s2692_s28  ;;  %p2699_p0 = scmp.lt.u32.totalorder %s2692_s28, %s3352_s6 }
  0x6d   : > { %p2695_p3 = pnand %p2693_p2, %p2945_p7 }
  0x6f   : > { %p2696_p13 = pneg %p2695_p3 }
  0x71   : > { %p2701_p1 = pnand %p2699_p0, %p2696_p13 }
  0x73   : > { %2704 = shalt.err (!%p2701_p1)
}
  0x74   : > { %s2705_s21 = scalar_lea.vmem %s476_s14, 2048  ;;  %p2713_p9 = scmp.lt.s32.totalorder %s476_s14, %s476_s14 }
  0x75   : > { %p2706_p4 = scmp.ne.s32.totalorder %s476_s14, %s2705_s21  ;;  %p2714_p10 = scmp.lt.s32.totalorder %s2705_s21, %s2705_s21 }
  0x77   : > { %p2708_p6 = pnand %p2706_p4, %p2945_p7  ;;  %p2715_p11 = por %p2714_p10, %p2713_p9 }
  0x79   : > { %p2709_p8 = pneg %p2708_p6 }
  0x7b   : > { %p2716_p12 = pnand %p2715_p11, %p2709_p8 }
  0x7d   : > { %2719 = shalt.err (!%p2716_p12)
}
  0x7e   : > { %2517 = dma.hbm_to_vmem [thread:$0]  (!%p2929_p5), %s3352_s6, 2048, %s476_s14, [#allocation6], %s2804_s23, %s2804_s23, %s2805_s24  }
  0x7f   : > { %s2720_s25 = scalar_lea.hbm %s3356_s10, 2048 }
  0x80   : > { %p2721_p2 = scmp.ne.s32.totalorder %s3356_s10, %s2720_s25  ;;  %p2727_p0 = scmp.lt.u32.totalorder %s2720_s25, %s3356_s10 }
  0x82   : > { %p2723_p3 = pnand %p2721_p2, %p2945_p7 }
  0x84   : > { %p2724_p13 = pneg %p2723_p3 }
  0x86   : > { %p2729_p1 = pnand %p2727_p0, %p2724_p13 }
  0x88   : > { %2732 = shalt.err (!%p2729_p1)
}
  0x89   : > { %s2733_s1 = scalar_lea.vmem %s508_s17, 2048  ;;  %p2741_p9 = scmp.lt.s32.totalorder %s508_s17, %s508_s17 }
  0x8a   : > { %p2734_p4 = scmp.ne.s32.totalorder %s508_s17, %s2733_s1  ;;  %p2742_p10 = scmp.lt.s32.totalorder %s2733_s1, %s2733_s1 }
  0x8c   : > { %p2736_p6 = pnand %p2734_p4, %p2945_p7  ;;  %p2743_p11 = por %p2742_p10, %p2741_p9 }
  0x8e   : > { %p2737_p8 = pneg %p2736_p6 }
  0x90   : > { %p2744_p12 = pnand %p2743_p11, %p2737_p8 }
  0x92   : > { %2747 = shalt.err (!%p2744_p12)
}
  0x93   : > { %2523 = dma.hbm_to_vmem [thread:$0]  (!%p2929_p5), %s3356_s10, 2048, %s508_s17, [#allocation9], %s2804_s23, %s2804_s23, %s2805_s24  }
  0x94   : > { %s2808_s30 = smov [#allocation13]   ;;  %s2748_s25 = scalar_lea.hbm %s3359_s13, 2048 }
  0x95   : > { %s536_s29 = sshll.u32 %s2808_s30, 4  ;;  %p2749_p2 = scmp.ne.s32.totalorder %s3359_s13, %s2748_s25  ;;  %s537_s29 = int_to_ptr.vmem [resolvable:$true] %s536_s29 }
  0x96   : > { %p2755_p0 = scmp.lt.u32.totalorder %s2748_s25, %s3359_s13 }
  0x97   : > { %p2751_p3 = pnand %p2749_p2, %p2945_p7 }
  0x99   : > { %p2752_p13 = pneg %p2751_p3 }
  0x9b   : > { %p2757_p1 = pnand %p2755_p0, %p2752_p13 }
  0x9d   : > { %2760 = shalt.err (!%p2757_p1)
}
  0x9e   : > { %s2761_s17 = scalar_lea.vmem %s537_s29, 2048  ;;  %p2769_p9 = scmp.lt.s32.totalorder %s537_s29, %s537_s29 }
  0x9f   : > { %p2762_p4 = scmp.ne.s32.totalorder %s537_s29, %s2761_s17  ;;  %p2770_p10 = scmp.lt.s32.totalorder %s2761_s17, %s2761_s17 }
  0xa1   : > { %p2764_p6 = pnand %p2762_p4, %p2945_p7  ;;  %p2771_p11 = por %p2770_p10, %p2769_p9 }
  0xa3   : > { %p2765_p8 = pneg %p2764_p6 }
  0xa5   : > { %p2772_p12 = pnand %p2771_p11, %p2765_p8 }
  0xa7   : > { %2775 = shalt.err (!%p2772_p12)
}
  0xa8   : > { %2529 = dma.hbm_to_vmem [thread:$0]  (!%p2929_p5), %s3359_s13, 2048, %s537_s29, [#allocation12], %s2804_s23, %s2804_s23, %s2805_s24  }
  0xa9   : > { %p3376_p2 = scmp.ne.s32.totalorder %s3373_s16, 0 }
  0xaa   : > { %p3377_p7 = scmp.eq.s32.totalorder (!%p3376_p2), %s2912_s27, 0 }
  0xab   : > { %575 = sbr.rel (%p3376_p2) target bundleno = 2772 (0xad4), region = 88 }
  0xb2   : > { %2781 = dma.done.wait (%p3377_p7), [#allocation4], 2048   ;;  %p3378_p3 = pmov %p3377_p7 }
  0xb4   : > { %2783 = vsyncadd (%p3378_p3), [#allocation4], 4294965248  ;;  %p3379_p13 = pmov %p3378_p3 }
  0xb5   : > { %p3380_p0 = pmov %p3378_p3 }
  0xb6   : > { %2785 = dma.done.wait (%p3379_p13), [#allocation6], 4096  }
  0xb7   : > { %2787 = vsyncadd (%p3380_p0), [#allocation6], 4294963200  ;;  %p3381_p1 = pmov %p3380_p0 }
  0xb8   : > { %p3382_p5 = pmov %p3380_p0 }
  0xb9   : > { %2789 = dma.done.wait (%p3381_p1), [#allocation9], 4096  }
  0xba   : > { %2791 = vsyncadd (%p3382_p5), [#allocation9], 4294963200  ;;  %p3383_p4 = pmov %p3380_p0 }
  0xbb   : > { %p3384_p6 = pmov %p3380_p0 }
  0xbc   : > { %2793 = dma.done.wait (%p3383_p4), [#allocation12], 4096  }
  0xbd   : > { %2795 = vsyncadd (%p3384_p6), [#allocation12], 4294963200  ;;  %p652_p8 = scmp.lt.s32.totalorder %s2912_s27, 1  ;;  %v666_v1 = vlaneseq  ;;  %v2809_v2 = vmov 0.0|0.0   ;;  %vm2810_vm0 = vmmov 0   ;;  %v2811_v3 = vmov 0.0  }
  0xbe   : > { %2312 = vmatprep.subr.bf16.mxu0 %v2809_v2  ;;  %2084 = vmatprep.mubr.msk.f32.mxu0 %vm2810_vm0, %v2811_v3  ;;  %v674_v6 = vld [vmem:[#allocation3] sm:$0xff]  ;;  %v675_v7 = vld [vmem:[#allocation3 + $0x8] sm:$0xff]  ;;  %v676_v8 = vld [vmem:[#allocation3 + $0x10] sm:$0xff]  ;;  %s3385_s23 = sld [smem:[#allocation19_spill]]  ;;  %vm691_vm2 = vcmask 64512   ;;  %s3386_s29 = sld [smem:[#allocation20_spill]] }
  0xbf   : > { %2336 = vmatprep.subr.bf16.mxu1 %v2809_v2  ;;  %2124 = vmatprep.mubr.msk.f32.mxu1 %vm2810_vm0, %v2811_v3  ;;  %v3131_v4 = vshrl.u32 %v666_v1, 7  ;;  %v3133_v5 = vand.u32 127, %v666_v1  ;;  %s3392_s27 = smov (!%p652_p8, %s2912_s27), 1  ;;  %v2313_v9 = vpack.c.bf16 %v675_v7, %v674_v6  ;;  %v677_v10 = vld [vmem:[#allocation3 + $0x18] sm:$0xff]  ;;  %v678_v13 = vld [vmem:[#allocation3 + $0x20] sm:$0xff]  ;;  %v679_v14 = vld [vmem:[#allocation3 + $0x28] sm:$0xff] }
  0xc0   : > { %s1903_s16 = sshll.u32 %s3392_s27, 3  ;;  %v2316_v11 = vpack.c.bf16 %v677_v10, %v676_v8  ;;  %v2319_v17 = vpack.c.bf16 %v679_v14, %v678_v13  ;;  %v680_v18 = vld [vmem:[#allocation3 + $0x30] sm:$0xff]  ;;  %v681_v19 = vld [vmem:[#allocation3 + $0x38] sm:$0xff]  ;;  %v682_v22 = vld [vmem:[#allocation3 + $0x40] sm:$0xff]  ;;  %s3388_s30 = sld [smem:[#allocation22_spill]] }
  0xc1   : > { %vm670_vm1 = vcmp.eq.s32.totalorder %v3131_v4, %v3133_v5  ;;  %2314 = vmatpush3.bf16.msra.mxu0 %v2313_v9  ;;  %v2322_v21 = vpack.c.bf16 %v681_v19, %v680_v18  ;;  %v683_v23 = vld [vmem:[#allocation3 + $0x48] sm:$0xff]  ;;  %v684_v25 = vld [vmem:[#allocation3 + $0x50] sm:$0xff]  ;;  %v685_v26 = vld [vmem:[#allocation3 + $0x58] sm:$0xff]  ;;  %s3389_s26 = sld [smem:[#allocation23_spill]] }
  0xc2   : > { %v3147_v12 = vsel %vm670_vm1, 1.0, %v2811_v3  ;;  %2315 = vmatprep.subr.bf16.mxu0 %v2809_v2  ;;  %v2325_v24 = vpack.c.bf16 %v683_v23, %v682_v22  ;;  %v2328_v27 = vpack.c.bf16 %v685_v26, %v684_v25  ;;  %v686_v28 = vld [vmem:[#allocation3 + $0x60] sm:$0xff]  ;;  %v687_v29 = vld [vmem:[#allocation3 + $0x68] sm:$0xff]  ;;  %v688_v31 = vld [vmem:[#allocation3 + $0x70] sm:$0xff] }
  0xc3   : > { %v2331_v30 = vpack.c.bf16 %v687_v29, %v686_v28  ;;  %v689_v32 = vld [vmem:[#allocation3 + $0x78] sm:$0xff]  ;;  %v968_v48 = vld [vmem:[#allocation5] sm:$0xff]  ;;  %v969_v49 = vld [vmem:[#allocation5 + $0x8] sm:$0xff] }
  0xc4   : > { %s655_s24 = scalar_lea.vmem %s3385_s23, %s1903_s16  ;;  %v2334_v33 = vpack.c.bf16 %v689_v32, %v688_v31  ;;  %s659_s15 = scalar_lea.vmem %s3386_s29, %s1903_s16  ;;  %v1907_v40 = vld [vmem:[%s3349_s3] ss:$0 sm:$0xff]  ;;  %v970_v50 = vld [vmem:[#allocation5 + $0x10] sm:$0xff]  ;;  %v2337_v51 = vpack.c.bf16 %v969_v49, %v968_v48  ;;  %v972_v54 = vld [vmem:[#allocation5 + $0x20] sm:$0xff] }
  0xc5   : > { %v3150_v15 = vld [vmem:[%s655_s24] sm:$0xff]  ;;  %2317 = vmatpush3.bf16.msra.mxu0 %v2316_v11  ;;  %v973_v55 = vld [vmem:[#allocation5 + $0x28] sm:$0xff]  ;;  %v974_v57 = vld [vmem:[#allocation5 + $0x30] sm:$0xff]  ;;  %s3387_s23 = sld [smem:[#allocation21_spill]] }
  0xc6   : > { %v673_v16 = vadd.f32 %v3147_v12, %v3150_v15  ;;  %2318 = vmatprep.subr.bf16.mxu0 %v2809_v2  ;;  %v664_v34 = vld [vmem:[%s659_s15] sm:$0xff]  ;;  %2338 = vmatpush3.bf16.msra.mxu1 %v2337_v51  ;;  %v2343_v56 = vpack.c.bf16 %v973_v55, %v972_v54  ;;  %v977_v61 = vld [vmem:[#allocation5 + $0x48] sm:$0xff]  ;;  %v978_v63 = vld [vmem:[#allocation5 + $0x50] sm:$0xff] }
  0xc7   : > { %v3179_v45 = vld [vmem:[%s3354_s8] ss:$0 sm:$0xff]  ;;  %2339 = vmatprep.subr.bf16.mxu1 %v2809_v2  ;;  %v976_v60 = vld [vmem:[#allocation5 + $0x40] sm:$0xff]  ;;  %v981_v7 = vld [vmem:[#allocation5 + $0x68] sm:$0xff]  ;;  %s662_s25 = scalar_lea.vmem %s3389_s26, %s3392_s27 }
  0xc8   : > { %v692_v20 = vsel %vm691_vm2, %v673_v16, 0.0  ;;  %v971_v52 = vld [vmem:[#allocation5 + $0x18] sm:$0xff]  ;;  %v2349_v62 = vpack.c.bf16 %v977_v61, %v976_v60  ;;  %v980_v6 = vld [vmem:[#allocation5 + $0x60] sm:$0xff]  ;;  %v982_v9 = vld [vmem:[#allocation5 + $0x70] sm:$0xff] }
  0xc9   : > { %693 = vadd.xlane.f32.xlu0 %v692_v20  ;;  %2320 = vmatpush3.bf16.msra.mxu0 %v2319_v17  ;;  %v2340_v53 = vpack.c.bf16 %v971_v52, %v970_v50  ;;  %v975_v58 = vld [vmem:[#allocation5 + $0x38] sm:$0xff]  ;;  %v2355_v8 = vpack.c.bf16 %v981_v7, %v980_v6 }
  0xca   : > { %2321 = vmatprep.subr.bf16.mxu0 %v2809_v2  ;;  %v2346_v59 = vpack.c.bf16 %v975_v58, %v974_v57  ;;  %v979_v0 = vld [vmem:[#allocation5 + $0x58] sm:$0xff] }
  0xcb   : > { %2341 = vmatpush3.bf16.msra.mxu1 %v2340_v53  ;;  %v2352_v1 = vpack.c.bf16 %v979_v0, %v978_v63  ;;  %v983_v10 = vld [vmem:[#allocation5 + $0x78] sm:$0xff] }
  0xcc   : > { %2342 = vmatprep.subr.bf16.mxu1 %v2809_v2  ;;  %v2358_v11 = vpack.c.bf16 %v983_v10, %v982_v9 }
  0xcd   : > { %2323 = vmatpush3.bf16.msra.mxu0 %v2322_v21  ;;  %v3198_v21 = vcvt.s32.f32 %v3131_v4 }
  0xce   : > { %2324 = vmatprep.subr.bf16.mxu0 %v2809_v2 }
  0xcf   : > { %2344 = vmatpush3.bf16.msra.mxu1 %v2343_v56 }
  0xd0   : > { %2345 = vmatprep.subr.bf16.mxu1 %v2809_v2 }
  0xd1   : > { %2326 = vmatpush3.bf16.msra.mxu0 %v2325_v24 }
  0xd2   : > { %2327 = vmatprep.subr.bf16.mxu0 %v2809_v2 }
  0xd3   : > { %2347 = vmatpush3.bf16.msra.mxu1 %v2346_v59 }
  0xd4   : > { %2348 = vmatprep.subr.bf16.mxu1 %v2809_v2 }
  0xd5   : > { %2329 = vmatpush3.bf16.msra.mxu0 %v2328_v27 }
  0xd6   : > { %2330 = vmatprep.subr.bf16.mxu0 %v2809_v2 }
  0xd7   : > { %2350 = vmatpush3.bf16.msra.mxu1 %v2349_v62 }
  0xd8   : > { %2351 = vmatprep.subr.bf16.mxu1 %v2809_v2 }
  0xd9   : > { %2332 = vmatpush3.bf16.msra.mxu0 %v2331_v30 }
  0xda   : > { %2333 = vmatprep.subr.bf16.mxu0 %v2809_v2 }
  0xdb   : > { %2353 = vmatpush3.bf16.msra.mxu1 %v2352_v1 }
  0xdc   : > { %2354 = vmatprep.subr.bf16.mxu1 %v2809_v2 }
  0xdd   : > { %2335 = vmatpush3.bf16.msra.mxu0 %v2334_v33 }
  0xde   : > { %2087 = vmatprep.subr.mxu0 %v2811_v3 }
  0xdf   : > { %2356 = vmatpush3.bf16.msra.mxu1 %v2355_v8 }
  0xe0   : > { %2085 = vmatmul.mubr.f32.vlgmr.msra.gmra.mrb[0].mxu0 %v664_v34  ;;  %2357 = vmatprep.subr.bf16.mxu1 %v2809_v2 }
  0xe1   : > { %2089 = vmatprep.mubr.msk.f32.mxu0 %vm2810_vm0, %v2811_v3 }
  0xe3   : > { %2359 = vmatpush3.bf16.msra.mxu1 %v2358_v11  ;;  %v3213_v11 = vcvt.s32.f32 %v3133_v5 }
  0xe4   : > { %2360 = vmatprep.subr.bf16.mxu1 %v2809_v2 }
 0x156   : > { %v694_v35 = vpop.xlane.xlu0 %693 }
 0x157   : > { %2566 = vrsqrt.f32 %v694_v35 }
 0x161   : > { %v2567_v36 = vpop.eup %2566 }
 0x1b3   : > { %v762_v37 = vpop.f32.mrb[0].mxu0 }
 0x1b4   : > { %v766_v38 = vmul.f32 %v2567_v36, %v762_v37  ;;  %v2086_v39 = vpop.f32.mrb[1].mxu0 }
 0x1b6   : > { %2088 = vmatpush3.msra.mxu0 %v766_v38 }
 0x1b7   : > { %2090 = vmatmul.mubr.msk.f32.vlgmr.msra.gmra.mrb[2].mxu0 %vm691_vm2, %v673_v16  ;;  %2127 = vmatprep.subr.mxu0 %v2811_v3 }
 0x1b8   : > { %2129 = vmatprep.mubr.msk.f32.mxu0 %vm2810_vm0, %v2811_v3 }
 0x28a   : > { %v836_v41 = vpop.f32.mrb[2].mxu0 }
 0x28b   : > { %v840_v42 = vmul.f32 %v2567_v36, %v836_v41  ;;  %v2091_v43 = vpop.f32.mrb[3].mxu0 }
 0x28d   : > { %v847_v44 = vadd.f32 %v1907_v40, %v840_v42 }
 0x28f   : > { %v3181_v46 = vmax.f32 %v847_v44, 0.0 }
 0x291   : > { %v861_v47 = vmul.f32 %v3179_v45, %v3181_v46 }
 0x293   : > { %862 = vadd.xlane.f32.xlu0 %v861_v47 }
 0x320   : > { %v863_v13 = vpop.xlane.xlu0 %862 }
 0x321   : > { %2568 = vtanh.f32 %v863_v13 }
 0x32b   : > { %v3193_v14 = vpop.eup %2568 }
 0x32c   : > { %v869_v16 = vrot.slane %v3193_v14, 4 }
 0x32e   : > { %v870_v17 = vmax.f32 %v3193_v14, %v869_v16 }
 0x330   : > { %v871_v18 = vrot.slane %v870_v17, 2 }
 0x332   : > { %v872_v19 = vmax.f32 %v870_v17, %v871_v18 }
 0x334   : > { %v873_v20 = vrot.slane %v872_v19, 1 }
 0x336   : > { %v874_v22 = vmax.f32 %v872_v19, %v873_v20 }
 0x338   : > { %vm875_vm3 = vcmp.ge.f32.partialorder %v3193_v14, %v874_v22 }
 0x339   : > { %v876_v23 = vsel %vm875_vm3, %v3198_v21, 8.0 }
 0x33a   : > { %v877_v24 = vrot.slane %v876_v23, 4 }
 0x33c   : > { %v878_v25 = vmin.f32 %v876_v23, %v877_v24 }
 0x33e   : > { %v879_v26 = vrot.slane %v878_v25, 2 }
 0x340   : > { %v880_v27 = vmin.f32 %v878_v25, %v879_v26 }
 0x342   : > { %v881_v28 = vrot.slane %v880_v27, 1 }
 0x344   : > { %v882_v29 = vmin.f32 %v880_v27, %v881_v28 }
 0x346   : > { %vm883_vm4 = vcmp.eq.f32.partialorder %v3198_v21, %v882_v29  ;;  %vm887_vm14 = vcmp.eq.f32.partialorder %v3213_v11, %v882_v29 }
 0x347   : > { %v1909_v30 = vsel %vm883_vm4, 1.0, %v2811_v3  ;;  %v1910_v20 = vsel %vm887_vm14, 1.0, %v2811_v3 }
 0x348   : > { %vm891_vm5 = vcmp.gt.f32.partialorder %v1909_v30, 0.0 }
 0x349   : > { %v892_v31 = vsel %vm891_vm5, -1e+30, %v3193_v14 }
 0x34a   : > { %v893_v4 = vrot.slane %v892_v31, 4 }
 0x34c   : > { %v894_v32 = vmax.f32 %v892_v31, %v893_v4 }
 0x34e   : > { %v895_v33 = vrot.slane %v894_v32, 2 }
 0x350   : > { %v896_v34 = vmax.f32 %v894_v32, %v895_v33 }
 0x352   : > { %v897_v35 = vrot.slane %v896_v34, 1 }
 0x354   : > { %v898_v36 = vmax.f32 %v896_v34, %v897_v35 }
 0x356   : > { %vm899_vm6 = vcmp.ge.f32.partialorder %v892_v31, %v898_v36 }
 0x357   : > { %v900_v37 = vsel %vm899_vm6, %v3198_v21, 8.0 }
 0x358   : > { %v901_v38 = vrot.slane %v900_v37, 4 }
 0x35a   : > { %v902_v39 = vmin.f32 %v900_v37, %v901_v38 }
 0x35c   : > { %v903_v40 = vrot.slane %v902_v39, 2 }
 0x35e   : > { %v904_v41 = vmin.f32 %v902_v39, %v903_v40  ;;  %v1918_v40 = vld [vmem:[%s3351_s5] ss:$0 sm:$0xff] }
 0x360   : > { %v905_v42 = vrot.slane %v904_v41, 1 }
 0x362   : > { %v906_v43 = vmin.f32 %v904_v41, %v905_v42 }
 0x364   : > { %vm907_vm7 = vcmp.eq.f32.partialorder %v3198_v21, %v906_v43  ;;  %vm911_vm13 = vcmp.eq.f32.partialorder %v3213_v11, %v906_v43 }
 0x365   : > { %v1911_v44 = vsel %vm907_vm7, 1.0, %v2811_v3  ;;  %v1912_v18 = vsel %vm911_vm13, 1.0, %v2811_v3 }
 0x366   : > { %vm915_vm8 = vcmp.gt.f32.partialorder %v1911_v44, 0.0  ;;  %v910_v23 = vadd.f32 %v1911_v44, %v1909_v30  ;;  %v914_v5 = vadd.f32 %v1912_v18, %v1910_v20 }
 0x367   : > { %v916_v47 = vsel %vm915_vm8, -1e+30, %v892_v31  ;;  %v963_v31 = vmul.f32 %v3193_v14, %v3181_v46 }
 0x368   : > { %v917_v48 = vrot.slane %v916_v47, 4 }
 0x36a   : > { %v918_v49 = vmax.f32 %v916_v47, %v917_v48 }
 0x36c   : > { %v919_v50 = vrot.slane %v918_v49, 2 }
 0x36e   : > { %v920_v51 = vmax.f32 %v918_v49, %v919_v50  ;;  %v1206_v50 = vld [vmem:[#allocation7] sm:$0xff] }
 0x370   : > { %v921_v52 = vrot.slane %v920_v51, 1 }
 0x372   : > { %v922_v53 = vmax.f32 %v920_v51, %v921_v52  ;;  %v1207_v51 = vld [vmem:[#allocation7 + $0x8] sm:$0xff]  ;;  %v1208_v52 = vld [vmem:[#allocation7 + $0x10] sm:$0xff] }
 0x374   : > { %vm923_vm9 = vcmp.ge.f32.partialorder %v916_v47, %v922_v53  ;;  %v2361_v53 = vpack.c.bf16 %v1207_v51, %v1206_v50  ;;  %v1388_v50 = vld [vmem:[#allocation8 + $0x8] sm:$0xff] }
 0x375   : > { %v924_v54 = vsel %vm923_vm9, %v3198_v21, 8.0 }
 0x376   : > { %v925_v55 = vrot.slane %v924_v54, 4 }
 0x378   : > { %v926_v56 = vmin.f32 %v924_v54, %v925_v55  ;;  %v1209_v54 = vld [vmem:[#allocation7 + $0x18] sm:$0xff] }
 0x379   : > { %v2364_v55 = vpack.c.bf16 %v1209_v54, %v1208_v52 }
 0x37a   : > { %v927_v57 = vrot.slane %v926_v56, 2 }
 0x37c   : > { %v928_v58 = vmin.f32 %v926_v56, %v927_v57  ;;  %v1210_v56 = vld [vmem:[#allocation7 + $0x20] sm:$0xff]  ;;  %v1211_v57 = vld [vmem:[#allocation7 + $0x28] sm:$0xff] }
 0x37e   : > { %v929_v59 = vrot.slane %v928_v58, 1 }
 0x380   : > { %v930_v60 = vmin.f32 %v928_v58, %v929_v59  ;;  %v2367_v58 = vpack.c.bf16 %v1211_v57, %v1210_v56  ;;  %v1212_v59 = vld [vmem:[#allocation7 + $0x30] sm:$0xff] }
 0x382   : > { %vm931_vm10 = vcmp.eq.f32.partialorder %v3198_v21, %v930_v60  ;;  %vm935_vm15 = vcmp.eq.f32.partialorder %v3213_v11, %v930_v60  ;;  %v1213_v60 = vld [vmem:[#allocation7 + $0x38] sm:$0xff] }
 0x383   : > { %v1913_v61 = vsel %vm931_vm10, 1.0, %v2811_v3  ;;  %v1914_v22 = vsel %vm935_vm15, 1.0, %v2811_v3 }
 0x384   : > { %vm939_vm11 = vcmp.gt.f32.partialorder %v1913_v61, 0.0  ;;  %v934_v25 = vadd.f32 %v1913_v61, %v910_v23  ;;  %v938_v26 = vadd.f32 %v1914_v22, %v914_v5  ;;  %v1214_v61 = vld [vmem:[#allocation7 + $0x40] sm:$0xff] }
 0x385   : > { %v940_v62 = vsel %vm939_vm11, -1e+30, %v916_v47 }
 0x386   : > { %v941_v63 = vrot.slane %v940_v62, 4 }
 0x388   : > { %v942_v0 = vmax.f32 %v940_v62, %v941_v63 }
 0x38a   : > { %v943_v1 = vrot.slane %v942_v0, 2 }
 0x38c   : > { %v944_v6 = vmax.f32 %v942_v0, %v943_v1  ;;  %v1216_v0 = vld [vmem:[#allocation7 + $0x50] sm:$0xff]  ;;  %v1217_v1 = vld [vmem:[#allocation7 + $0x58] sm:$0xff] }
 0x38e   : > { %v945_v7 = vrot.slane %v944_v6, 1 }
 0x390   : > { %v946_v8 = vmax.f32 %v944_v6, %v945_v7  ;;  %v2376_v6 = vpack.c.bf16 %v1217_v1, %v1216_v0  ;;  %v1218_v7 = vld [vmem:[#allocation7 + $0x60] sm:$0xff] }
 0x392   : > { %vm947_vm12 = vcmp.ge.f32.partialorder %v940_v62, %v946_v8  ;;  %v1215_v62 = vld [vmem:[#allocation7 + $0x48] sm:$0xff] }
 0x393   : > { %v948_v9 = vsel %vm947_vm12, %v3198_v21, 8.0  ;;  %v2373_v63 = vpack.c.bf16 %v1215_v62, %v1214_v61  ;;  %v1219_v8 = vld [vmem:[#allocation7 + $0x68] sm:$0xff]  ;;  %v1391_v62 = vld [vmem:[#allocation8 + $0x20] sm:$0xff] }
 0x394   : > { %v949_v10 = vrot.slane %v948_v9, 4 }
 0x396   : > { %v950_v13 = vmin.f32 %v948_v9, %v949_v10  ;;  %v2379_v9 = vpack.c.bf16 %v1219_v8, %v1218_v7  ;;  %v1220_v10 = vld [vmem:[#allocation7 + $0x70] sm:$0xff]  ;;  %v849_v8 = vrot.slane %v3181_v46, 4 }
 0x398   : > { %v951_v16 = vrot.slane %v950_v13, 2 }
 0x39a   : > { %v952_v17 = vmin.f32 %v950_v13, %v951_v16  ;;  %v1221_v13 = vld [vmem:[#allocation7 + $0x78] sm:$0xff] }
 0x39b   : > { %v2382_v16 = vpack.c.bf16 %v1221_v13, %v1220_v10  ;;  %v1396_v10 = vld [vmem:[#allocation8 + $0x48] sm:$0xff]  ;;  %v850_v13 = vadd.f32 %v849_v8, %v3181_v46  ;;  %v1563_v8 = vld [vmem:[#allocation11 + $0x20] sm:$0xff] }
 0x39c   : > { %v953_v19 = vrot.slane %v952_v17, 1 }
 0x39e   : > { %v954_v24 = vmin.f32 %v952_v17, %v953_v19 }
 0x3a0   : > { %vm955_vm1 = vcmp.eq.f32.partialorder %v3198_v21, %v954_v24  ;;  %vm959_vm3 = vcmp.eq.f32.partialorder %v3213_v11, %v954_v24 }
 0x3a1   : > { %v1915_v27 = vsel %vm955_vm1, 1.0, %v2811_v3  ;;  %v1916_v28 = vsel %vm959_vm3, 1.0, %v2811_v3 }
 0x3a2   : > { %v3225_v29 = vadd.f32 %v1915_v27, %v934_v25  ;;  %v962_v4 = vadd.f32 %v1916_v28, %v938_v26 }
 0x3a4   : > { %v964_v30 = vmul.f32 %v963_v31, %v3225_v29  ;;  %v965_v32 = vmul.f32 %v962_v4, %v3225_v29  ;;  %vm1153_vm4 = vcmp.gt.f32.partialorder %v3225_v29, 0.0 }
 0x3a6   : > { %2125 = vmatmul.mubr.f32.vlgmr.msra.gmra.mrb[0].mxu1 %v964_v30  ;;  %v966_v33 = vmul.f32 %v965_v32, %v3150_v15 }
 0x3a7   : > { %2164 = vmatprep.mubr.msk.f32.mxu1 %vm2810_vm0, %v2811_v3  ;;  %2362 = vmatpush3.bf16.msra.mxu1 %v2361_v53 }
 0x3a8   : > { %v967_v34 = vadd.f32 %v3147_v12, %v966_v33  ;;  %2363 = vmatprep.subr.bf16.mxu1 %v2809_v2 }
 0x3aa   : > { %v985_v35 = vsel %vm691_vm2, %v967_v34, 0.0 }
 0x3ab   : > { %986 = vadd.xlane.f32.xlu1 %v985_v35  ;;  %2365 = vmatpush3.bf16.msra.mxu1 %v2364_v55 }
 0x3ac   : > { %2366 = vmatprep.subr.bf16.mxu1 %v2809_v2 }
 0x3af   : > { %2368 = vmatpush3.bf16.msra.mxu1 %v2367_v58 }
 0x3b0   : > { %2369 = vmatprep.subr.bf16.mxu1 %v2809_v2 }
 0x438   : > { %v987_v36 = vpop.xlane.xlu1 %986 }
 0x439   : > { %2570 = vrsqrt.f32 %v987_v36 }
 0x443   : > { %v2571_v37 = vpop.eup %2570 }
 0x479   : > { %v1055_v14 = vpop.f32.mrb[0].mxu1 }
 0x47a   : > { %v1059_v38 = vmul.f32 %v2571_v37, %v1055_v14  ;;  %v2126_v39 = vpop.f32.mrb[1].mxu1 }
 0x47c   : > { %2128 = vmatpush3.msra.mxu0 %v1059_v38 }
 0x47d   : > { %2130 = vmatmul.mubr.msk.f32.vlgmr.msra.gmra.mrb[4].mxu0 %vm691_vm2, %v967_v34  ;;  %2167 = vmatprep.subr.mxu0 %v2811_v3 }
 0x47e   : > { %2169 = vmatprep.mubr.msk.f32.mxu0 %vm2810_vm0, %v2811_v3 }
 0x550   : > { %v1129_v41 = vpop.f32.mrb[4].mxu0 }
 0x551   : > { %v1133_v42 = vmul.f32 %v2571_v37, %v1129_v41  ;;  %v2131_v43 = vpop.f32.mrb[5].mxu0 }
 0x553   : > { %v1140_v44 = vadd.f32 %v1918_v40, %v1133_v42 }
 0x555   : > { %v1141_v47 = vmax.f32 %v1140_v44, 0.0 }
 0x557   : > { %v3244_v48 = vmul.f32 %v1141_v47, %v3225_v29 }
 0x559   : > { %v1149_v49 = vmul.f32 %v3179_v45, %v3244_v48  ;;  %v2370_v45 = vpack.c.bf16 %v1213_v60, %v1212_v59  ;;  %v1389_v59 = vld [vmem:[#allocation8 + $0x10] sm:$0xff] }
 0x55b   : > { %1150 = vadd.xlane.f32.xlu1 %v1149_v49  ;;  %2371 = vmatpush3.bf16.msra.mxu1 %v2370_v45  ;;  %v1387_v49 = vld [vmem:[#allocation8] sm:$0xff] }
 0x55c   : > { %2372 = vmatprep.subr.bf16.mxu1 %v2809_v2  ;;  %v2409_v57 = vpack.c.bf16 %v1388_v50, %v1387_v49  ;;  %v1413_v50 = vld [vmem:[#allocation10 + $0x50] sm:$0xff] }
 0x55f   : > { %2374 = vmatpush3.bf16.msra.mxu1 %v2373_v63  ;;  %v1392_v63 = vld [vmem:[#allocation8 + $0x28] sm:$0xff] }
 0x560   : > { %2375 = vmatprep.subr.bf16.mxu1 %v2809_v2  ;;  %v2415_v1 = vpack.c.bf16 %v1392_v63, %v1391_v62 }
 0x563   : > { %2377 = vmatpush3.bf16.msra.mxu1 %v2376_v6  ;;  %v1393_v6 = vld [vmem:[#allocation8 + $0x30] sm:$0xff] }
 0x564   : > { %2378 = vmatprep.subr.bf16.mxu1 %v2809_v2 }
 0x567   : > { %2380 = vmatpush3.bf16.msra.mxu1 %v2379_v9  ;;  %v1395_v9 = vld [vmem:[#allocation8 + $0x40] sm:$0xff] }
 0x568   : > { %2381 = vmatprep.subr.bf16.mxu1 %v2809_v2 }
 0x56b   : > { %2383 = vmatpush3.bf16.msra.mxu1 %v2382_v16  ;;  %v1397_v16 = vld [vmem:[#allocation8 + $0x50] sm:$0xff] }
 0x56c   : > { %2408 = vmatprep.subr.bf16.mxu1 %v2809_v2 }
 0x5e8   : > { %v1151_v17 = vpop.xlane.xlu1 %1150 }
 0x5e9   : > { %2572 = vtanh.f32 %v1151_v17  ;;  %v1398_v17 = vld [vmem:[#allocation8 + $0x58] sm:$0xff] }
 0x5f3   : > { %v2573_v18 = vpop.eup %2572 }
 0x5f4   : > { %v1154_v19 = vsel %vm1153_vm4, %v2573_v18, -1e+30  ;;  %v1201_v55 = vmul.f32 %v2573_v18, %v3244_v48  ;;  %v2424_v18 = vpack.c.bf16 %v1398_v17, %v1397_v16  ;;  %v1567_v17 = vld [vmem:[#allocation11 + $0x40] sm:$0xff] }
 0x5f5   : > { %v1155_v20 = vrot.slane %v1154_v19, 4 }
 0x5f7   : > { %v1156_v22 = vmax.f32 %v1154_v19, %v1155_v20  ;;  %v1400_v20 = vld [vmem:[#allocation8 + $0x68] sm:$0xff] }
 0x5f9   : > { %v1157_v23 = vrot.slane %v1156_v22, 2 }
 0x5fb   : > { %v1158_v24 = vmax.f32 %v1156_v22, %v1157_v23  ;;  %v851_v22 = vrot.slane %v850_v13, 2 }
 0x5fd   : > { %v1159_v5 = vrot.slane %v1158_v24, 1 }
 0x5ff   : > { %v1160_v25 = vmax.f32 %v1158_v24, %v1159_v5  ;;  %v1401_v24 = vld [vmem:[#allocation8 + $0x70] sm:$0xff]  ;;  %v1402_v5 = vld [vmem:[#allocation8 + $0x78] sm:$0xff] }
 0x600   : > { %v2430_v46 = vpack.c.bf16 %v1402_v5, %v1401_v24  ;;  %v1572_v24 = vld [vmem:[#allocation11 + $0x68] sm:$0xff] }
 0x601   : > { %vm1161_vm5 = vcmp.ge.f32.partialorder %v1154_v19, %v1160_v25  ;;  %v852_v25 = vadd.f32 %v851_v22, %v850_v13  ;;  %v1566_v13 = vld [vmem:[#allocation11 + $0x38] sm:$0xff] }
 0x602   : > { %v1162_v26 = vsel %vm1161_vm5, %v3198_v21, 8.0 }
 0x603   : > { %v1163_v27 = vrot.slane %v1162_v26, 4 }
 0x605   : > { %v1164_v28 = vmin.f32 %v1162_v26, %v1163_v27  ;;  %v853_v26 = vrot.slane %v852_v25, 1 }
 0x607   : > { %v1165_v31 = vrot.slane %v1164_v28, 2  ;;  %v854_v27 = vadd.f32 %v853_v26, %v852_v25  ;;  %v1573_v25 = vld [vmem:[#allocation11 + $0x70] sm:$0xff] }
 0x609   : > { %v1166_v4 = vmin.f32 %v1164_v28, %v1165_v31  ;;  %v1403_v31 = vld [vmem:[#allocation10] sm:$0xff] }
 0x60b   : > { %v1167_v30 = vrot.slane %v1166_v4, 1 }
 0x60d   : > { %v1168_v32 = vmin.f32 %v1166_v4, %v1167_v30  ;;  %v1404_v4 = vld [vmem:[#allocation10 + $0x8] sm:$0xff] }
 0x60f   : > { %vm1169_vm6 = vcmp.eq.f32.partialorder %v3198_v21, %v1168_v32  ;;  %vm1173_vm9 = vcmp.eq.f32.partialorder %v3213_v11, %v1168_v32 }
 0x610   : > { %v1919_v29 = vsel %vm1169_vm6, 1.0, %v2811_v3  ;;  %v1920_v52 = vsel %vm1173_vm9, 1.0, %v2811_v3 }
 0x611   : > { %vm1177_vm7 = vcmp.gt.f32.partialorder %v1919_v29, 0.0 }
 0x612   : > { %v1178_v33 = vsel %vm1177_vm7, -1e+30, %v1154_v19  ;;  %v1399_v19 = vld [vmem:[#allocation8 + $0x60] sm:$0xff] }
 0x613   : > { %v1179_v34 = vrot.slane %v1178_v33, 4  ;;  %v2427_v23 = vpack.c.bf16 %v1400_v20, %v1399_v19  ;;  %v1569_v19 = vld [vmem:[#allocation11 + $0x50] sm:$0xff]  ;;  %v1570_v20 = vld [vmem:[#allocation11 + $0x58] sm:$0xff] }
 0x614   : > { %v2448_v22 = vpack.c.bf16 %v1570_v20, %v1569_v19  ;;  %v1743_v19 = vld [vmem:[#allocation2] sm:$0x1] }
 0x615   : > { %v1180_v35 = vmax.f32 %v1178_v33, %v1179_v34  ;;  %v2385_v34 = vpack.c.bf16 %v1404_v4, %v1403_v31  ;;  %v1651_v31 = vld [vmem:[#allocation13 + $0x10] sm:$0xff] }
 0x617   : > { %v1181_v36 = vrot.slane %v1180_v35, 2 }
 0x619   : > { %v1182_v37 = vmax.f32 %v1180_v35, %v1181_v36  ;;  %v1405_v35 = vld [vmem:[#allocation10 + $0x10] sm:$0xff]  ;;  %v1406_v36 = vld [vmem:[#allocation10 + $0x18] sm:$0xff] }
 0x61b   : > { %v1183_v14 = vrot.slane %v1182_v37, 1 }
 0x61d   : > { %v1184_v38 = vmax.f32 %v1182_v37, %v1183_v14  ;;  %v2388_v37 = vpack.c.bf16 %v1406_v36, %v1405_v35  ;;  %v1407_v14 = vld [vmem:[#allocation10 + $0x20] sm:$0xff]  ;;  %v1655_v36 = vld [vmem:[#allocation13 + $0x30] sm:$0xff] }
 0x61f   : > { %vm1185_vm8 = vcmp.ge.f32.partialorder %v1178_v33, %v1184_v38  ;;  %v1408_v38 = vld [vmem:[#allocation10 + $0x28] sm:$0xff] }
 0x620   : > { %v1186_v39 = vsel %vm1185_vm8, %v3198_v21, 8.0 }
 0x621   : > { %v1187_v40 = vrot.slane %v1186_v39, 4 }
 0x623   : > { %v1188_v41 = vmin.f32 %v1186_v39, %v1187_v40  ;;  %v2391_v39 = vpack.c.bf16 %v1408_v38, %v1407_v14  ;;  %v1409_v40 = vld [vmem:[#allocation10 + $0x30] sm:$0xff]  ;;  %v1657_v38 = vld [vmem:[#allocation13 + $0x40] sm:$0xff] }
 0x625   : > { %v1189_v42 = vrot.slane %v1188_v41, 2 }
 0x627   : > { %v1190_v43 = vmin.f32 %v1188_v41, %v1189_v42  ;;  %v1410_v41 = vld [vmem:[#allocation10 + $0x38] sm:$0xff] }
 0x628   : > { %v2394_v42 = vpack.c.bf16 %v1410_v41, %v1409_v40  ;;  %v1659_v41 = vld [vmem:[#allocation13 + $0x50] sm:$0xff] }
 0x629   : > { %v1191_v44 = vrot.slane %v1190_v43, 1 }
 0x62b   : > { %v1192_v47 = vmin.f32 %v1190_v43, %v1191_v44  ;;  %v1143_v43 = vrot.slane %v3244_v48, 4  ;;  %v1411_v44 = vld [vmem:[#allocation10 + $0x40] sm:$0xff] }
 0x62d   : > { %vm1193_vm10 = vcmp.eq.f32.partialorder %v3198_v21, %v1192_v47  ;;  %vm1197_vm11 = vcmp.eq.f32.partialorder %v3213_v11, %v1192_v47  ;;  %v1390_v21 = vld [vmem:[#allocation8 + $0x18] sm:$0xff]  ;;  %v1412_v47 = vld [vmem:[#allocation10 + $0x48] sm:$0xff] }
 0x62e   : > { %v1921_v51 = vsel %vm1193_vm10, 1.0, %v2811_v3  ;;  %v1922_v53 = vsel %vm1197_vm11, 1.0, %v2811_v3  ;;  %v2412_v45 = vpack.c.bf16 %v1390_v21, %v1389_v59  ;;  %v2397_v49 = vpack.c.bf16 %v1412_v47, %v1411_v44  ;;  %v1417_v59 = vld [vmem:[#allocation10 + $0x70] sm:$0xff]  ;;  %v1418_v21 = vld [vmem:[#allocation10 + $0x78] sm:$0xff] }
 0x62f   : > { %v3267_v54 = vadd.f32 %v1921_v51, %v1919_v29  ;;  %v1200_v56 = vadd.f32 %v1922_v53, %v1920_v52  ;;  %v1414_v51 = vld [vmem:[#allocation10 + $0x58] sm:$0xff]  ;;  %v1144_v52 = vadd.f32 %v1143_v43, %v3244_v48  ;;  %v1559_v48 = vld [vmem:[#allocation11] sm:$0xff] }
 0x630   : > { %v2400_v53 = vpack.c.bf16 %v1414_v51, %v1413_v50  ;;  %v1924_v44 = vld [vmem:[%s3353_s7] ss:$0 sm:$0xff] }
 0x631   : > { %v1202_v58 = vmul.f32 %v1201_v55, %v3267_v54  ;;  %v1203_v60 = vmul.f32 %v1200_v56, %v3267_v54  ;;  %v1415_v55 = vld [vmem:[#allocation10 + $0x60] sm:$0xff]  ;;  %v1416_v56 = vld [vmem:[#allocation10 + $0x68] sm:$0xff] }
 0x633   : > { %2165 = vmatmul.mubr.f32.vlgmr.msra.gmra.mrb[2].mxu1 %v1202_v58  ;;  %v1204_v11 = vmul.f32 %v1203_v60, %v3150_v15  ;;  %v1394_v15 = vld [vmem:[#allocation8 + $0x38] sm:$0xff]  ;;  %v2403_v58 = vpack.c.bf16 %v1416_v56, %v1415_v55 }
 0x634   : > { %2410 = vmatpush3.bf16.msra.mxu1 %v2409_v57  ;;  %2239 = vmatprep.mubr.msk.f32.mxu1 %vm2810_vm0, %v2811_v3  ;;  %v2418_v7 = vpack.c.bf16 %v1394_v15, %v1393_v6  ;;  %v1145_v57 = vrot.slane %v1144_v52, 2  ;;  %v1561_v6 = vld [vmem:[#allocation11 + $0x10] sm:$0xff]  ;;  %v1562_v15 = vld [vmem:[#allocation11 + $0x18] sm:$0xff] }
 0x635   : > { %2411 = vmatprep.subr.bf16.mxu1 %v2809_v2  ;;  %v1205_v61 = vadd.f32 %v3147_v12, %v1204_v11  ;;  %v2421_v12 = vpack.c.bf16 %v1396_v10, %v1395_v9  ;;  %v2406_v11 = vpack.c.bf16 %v1418_v21, %v1417_v59  ;;  %v1564_v9 = vld [vmem:[#allocation11 + $0x28] sm:$0xff] }
 0x636   : > { %v1146_v60 = vadd.f32 %v1145_v57, %v1144_v52  ;;  %v2439_v10 = vpack.c.bf16 %v1564_v9, %v1563_v8  ;;  %v1665_v9 = vld [vmem:[%s3387_s23] sm:$0x1] }
 0x637   : > { %v1223_v0 = vsel %vm691_vm2, %v1205_v61, 0.0 }
 0x638   : > { %2413 = vmatpush3.bf16.msra.mxu1 %v2412_v45  ;;  %1224 = vadd.xlane.f32.xlu0 %v1223_v0  ;;  %v1147_v45 = vrot.slane %v1146_v60, 1 }
 0x639   : > { %2414 = vmatprep.subr.bf16.mxu1 %v2809_v2 }
 0x63c   : > { %2416 = vmatpush3.bf16.msra.mxu1 %v2415_v1  ;;  %v1148_v1 = vadd.f32 %v1147_v45, %v1146_v60 }
 0x63d   : > { %2417 = vmatprep.subr.bf16.mxu1 %v2809_v2 }
 0x640   : > { %2419 = vmatpush3.bf16.msra.mxu1 %v2418_v7  ;;  %v2436_v7 = vpack.c.bf16 %v1562_v15, %v1561_v6  ;;  %v1646_v6 = vld [vmem:[%s3358_s12] sm:$0x1] }
 0x641   : > { %2420 = vmatprep.subr.bf16.mxu1 %v2809_v2 }
 0x644   : > { %2422 = vmatpush3.bf16.msra.mxu1 %v2421_v12  ;;  %v1565_v12 = vld [vmem:[#allocation11 + $0x30] sm:$0xff] }
 0x645   : > { %2423 = vmatprep.subr.bf16.mxu1 %v2809_v2  ;;  %v2442_v16 = vpack.c.bf16 %v1566_v13, %v1565_v12  ;;  %v1737_v13 = vld [vmem:[%s3388_s30] sm:$0x1] }
 0x648   : > { %2425 = vmatpush3.bf16.msra.mxu1 %v2424_v18  ;;  %v1568_v18 = vld [vmem:[#allocation11 + $0x48] sm:$0xff] }
 0x649   : > { %2426 = vmatprep.subr.bf16.mxu1 %v2809_v2 }
 0x64c   : > { %2428 = vmatpush3.bf16.msra.mxu1 %v2427_v23  ;;  %v1571_v23 = vld [vmem:[#allocation11 + $0x60] sm:$0xff] }
 0x64d   : > { %2429 = vmatprep.subr.bf16.mxu1 %v2809_v2  ;;  %v2451_v5 = vpack.c.bf16 %v1572_v24, %v1571_v23 }
 0x650   : > { %2431 = vmatpush3.bf16.msra.mxu1 %v2430_v46  ;;  %v1574_v46 = vld [vmem:[#allocation11 + $0x78] sm:$0xff] }
 0x651   : > { %2456 = vmatprep.subr.bf16.mxu1 %v2809_v2  ;;  %v2454_v26 = vpack.c.bf16 %v1574_v46, %v1573_v25 }
 0x653   : > { %2240 = vmatmul.mubr.f32.vlgmr.msra.gmra.mrb[4].mxu1 %v854_v27  ;;  %v1649_v27 = vld [vmem:[#allocation13] sm:$0xff] }
 0x654   : > { %2309 = vmatprep.mubr.msk.f32.mxu1 %vm2810_vm0, %v2811_v3 }
 0x6c5   : > { %v1225_v28 = vpop.xlane.xlu0 %1224 }
 0x6c6   : > { %2574 = vrsqrt.f32 %v1225_v28  ;;  %v1650_v28 = vld [vmem:[#allocation13 + $0x8] sm:$0xff] }
 0x6c7   : > { %v2457_v4 = vpack.c.bf16 %v1650_v28, %v1649_v27 }
 0x6c9   : > { %2458 = vmatpush3.bf16.msra.mxu1 %v2457_v4 }
 0x6ca   : > { %2459 = vmatprep.subr.bf16.mxu1 %v2809_v2 }
 0x6d0   : > { %v3289_v30 = vpop.eup %2574 }
 0x706   : > { %v1293_v32 = vpop.f32.mrb[2].mxu1 }
 0x707   : > { %v1297_v29 = vmul.f32 %v3289_v30, %v1293_v32  ;;  %v2166_v33 = vpop.f32.mrb[3].mxu1  ;;  %v1652_v32 = vld [vmem:[#allocation13 + $0x18] sm:$0xff] }
 0x708   : > { %v1653_v33 = vld [vmem:[#allocation13 + $0x20] sm:$0xff] }
 0x709   : > { %2168 = vmatpush3.msra.mxu0 %v1297_v29  ;;  %v2460_v29 = vpack.c.bf16 %v1652_v32, %v1651_v31 }
 0x70a   : > { %2170 = vmatmul.mubr.msk.f32.vlgmr.msra.gmra.mrb[6].mxu0 %vm691_vm2, %v1205_v61  ;;  %2384 = vmatprep.subr.bf16.mxu0 %v2809_v2  ;;  %v1560_v61 = vld [vmem:[#allocation11 + $0x8] sm:$0xff] }
 0x70b   : > { %2386 = vmatpush3.bf16.msra.mxu0 %v2385_v34  ;;  %2204 = vmatprep.mubr.msk.f32.mxu0 %vm2810_vm0, %v2811_v3  ;;  %v2433_v0 = vpack.c.bf16 %v1560_v61, %v1559_v48  ;;  %v1654_v34 = vld [vmem:[#allocation13 + $0x28] sm:$0xff]  ;;  %v1661_v48 = vld [vmem:[#allocation13 + $0x60] sm:$0xff] }
 0x70c   : > { %2387 = vmatprep.subr.bf16.mxu0 %v2809_v2  ;;  %2461 = vmatpush3.bf16.msra.mxu1 %v2460_v29  ;;  %v2463_v35 = vpack.c.bf16 %v1654_v34, %v1653_v33  ;;  %v1662_v61 = vld [vmem:[#allocation13 + $0x68] sm:$0xff] }
 0x70d   : > { %2462 = vmatprep.subr.bf16.mxu1 %v2809_v2 }
 0x70f   : > { %2389 = vmatpush3.bf16.msra.mxu0 %v2388_v37  ;;  %v1656_v37 = vld [vmem:[#allocation13 + $0x38] sm:$0xff] }
 0x710   : > { %2390 = vmatprep.subr.bf16.mxu0 %v2809_v2  ;;  %2464 = vmatpush3.bf16.msra.mxu1 %v2463_v35  ;;  %v2466_v14 = vpack.c.bf16 %v1656_v37, %v1655_v36 }
 0x711   : > { %2465 = vmatprep.subr.bf16.mxu1 %v2809_v2 }
 0x713   : > { %2392 = vmatpush3.bf16.msra.mxu0 %v2391_v39  ;;  %v1658_v39 = vld [vmem:[#allocation13 + $0x48] sm:$0xff] }
 0x714   : > { %2393 = vmatprep.subr.bf16.mxu0 %v2809_v2  ;;  %2467 = vmatpush3.bf16.msra.mxu1 %v2466_v14  ;;  %v2469_v40 = vpack.c.bf16 %v1658_v39, %v1657_v38 }
 0x715   : > { %2468 = vmatprep.subr.bf16.mxu1 %v2809_v2 }
 0x717   : > { %2395 = vmatpush3.bf16.msra.mxu0 %v2394_v42  ;;  %v1660_v42 = vld [vmem:[#allocation13 + $0x58] sm:$0xff] }
 0x718   : > { %2396 = vmatprep.subr.bf16.mxu0 %v2809_v2  ;;  %2470 = vmatpush3.bf16.msra.mxu1 %v2469_v40  ;;  %v2472_v43 = vpack.c.bf16 %v1660_v42, %v1659_v41 }
 0x719   : > { %2471 = vmatprep.subr.bf16.mxu1 %v2809_v2 }
 0x71b   : > { %2398 = vmatpush3.bf16.msra.mxu0 %v2397_v49 }
 0x71c   : > { %2399 = vmatprep.subr.bf16.mxu0 %v2809_v2  ;;  %2473 = vmatpush3.bf16.msra.mxu1 %v2472_v43 }
 0x71d   : > { %2474 = vmatprep.subr.bf16.mxu1 %v2809_v2 }
 0x71f   : > { %2401 = vmatpush3.bf16.msra.mxu0 %v2400_v53 }
 0x720   : > { %2402 = vmatprep.subr.bf16.mxu0 %v2809_v2 }
 0x723   : > { %2404 = vmatpush3.bf16.msra.mxu0 %v2403_v58 }
 0x724   : > { %2405 = vmatprep.subr.bf16.mxu0 %v2809_v2 }
 0x726   : > { %v3305_v62 = vpop.f32.mrb[4].mxu1 }
 0x727   : > { %v2241_v63 = vpop.f32.mrb[5].mxu1  ;;  %2407 = vmatpush3.bf16.msra.mxu0 %v2406_v11 }
 0x728   : > { %2432 = vmatprep.subr.bf16.mxu0 %v2809_v2  ;;  %v2475_v63 = vpack.c.bf16 %v1662_v61, %v1661_v48 }
 0x72a   : > { %2205 = vmatmul.mubr.f32.vlgmr.msra.gmra.mrb[8].mxu0 %v1148_v1  ;;  %2476 = vmatpush3.bf16.msra.mxu1 %v2475_v63 }
 0x72b   : > { %2434 = vmatpush3.bf16.msra.mxu0 %v2433_v0  ;;  %2274 = vmatprep.mubr.msk.f32.mxu0 %vm2810_vm0, %v2811_v3  ;;  %v2445_v3 = vpack.c.bf16 %v1568_v18, %v1567_v17  ;;  %v1664_v0 = vld [vmem:[#allocation13 + $0x78] sm:$0xff]  ;;  %vm1739_vm0 = vcmask 1040384  }
 0x72c   : > { %2435 = vmatprep.subr.bf16.mxu0 %v2809_v2  ;;  %2477 = vmatprep.subr.bf16.mxu1 %v2809_v2 }
 0x72f   : > { %2437 = vmatpush3.bf16.msra.mxu0 %v2436_v7 }
 0x730   : > { %2438 = vmatprep.subr.bf16.mxu0 %v2809_v2 }
 0x733   : > { %2440 = vmatpush3.bf16.msra.mxu0 %v2439_v10 }
 0x734   : > { %2441 = vmatprep.subr.bf16.mxu0 %v2809_v2 }
 0x737   : > { %2443 = vmatpush3.bf16.msra.mxu0 %v2442_v16 }
 0x738   : > { %2444 = vmatprep.subr.bf16.mxu0 %v2809_v2 }
 0x73b   : > { %2446 = vmatpush3.bf16.msra.mxu0 %v2445_v3  ;;  %v2812_v3 = vmov 0  }
 0x73c   : > { %2447 = vmatprep.subr.bf16.mxu0 %v2809_v2  ;;  %2565 = vset.pattern.permute.xlu0 %v2812_v3 }
 0x73f   : > { %2449 = vmatpush3.bf16.msra.mxu0 %v2448_v22 }
 0x740   : > { %2450 = vmatprep.subr.bf16.mxu0 %v2809_v2 }
 0x743   : > { %2452 = vmatpush3.bf16.msra.mxu0 %v2451_v5 }
 0x744   : > { %2453 = vmatprep.subr.bf16.mxu0 %v2809_v2 }
 0x747   : > { %2455 = vmatpush3.bf16.msra.mxu0 %v2454_v26 }
 0x7dd   : > { %v1367_v47 = vpop.f32.mrb[6].mxu0 }
 0x7de   : > { %v1371_v49 = vmul.f32 %v3289_v30, %v1367_v47  ;;  %v2171_v50 = vpop.f32.mrb[7].mxu0  ;;  %v1663_v30 = vld [vmem:[#allocation13 + $0x70] sm:$0xff] }
 0x7e0   : > { %v1378_v51 = vadd.f32 %v1924_v44, %v1371_v49 }
 0x7e2   : > { %v1379_v52 = vmax.f32 %v1378_v51, 0.0 }
 0x7e4   : > { %v1380_v53 = vmul.f32 %v1379_v52, %v3267_v54  ;;  %v2478_v54 = vpack.c.bf16 %v1664_v0, %v1663_v30 }
 0x7e6   : > { %v1381_v55 = vrot.slane %v1380_v53, 4  ;;  %2479 = vmatpush3.bf16.msra.mxu1 %v2478_v54 }
 0x7e8   : > { %v1382_v56 = vadd.f32 %v1381_v55, %v1380_v53 }
 0x7ea   : > { %v1383_v57 = vrot.slane %v1382_v56, 2 }
 0x7ec   : > { %v1384_v58 = vadd.f32 %v1383_v57, %v1382_v56 }
 0x7ee   : > { %v1385_v59 = vrot.slane %v1384_v58, 1 }
 0x7f0   : > { %v1386_v21 = vadd.f32 %v1385_v59, %v1384_v58 }
 0x7f2   : > { %2275 = vmatmul.mubr.f32.vlgmr.msra.gmra.mrb[10].mxu0 %v1386_v21 }
 0x7fd   : > { %v1485_v60 = vpop.f32.mrb[8].mxu0 }
 0x7fe   : > { %v1556_v11 = vadd.f32 %v3305_v62, %v1485_v60  ;;  %v2206_v45 = vpop.f32.mrb[9].mxu0 }
 0x8c5   : > { %v1641_v1 = vpop.f32.mrb[10].mxu0 }
 0x8c6   : > { %v1645_v15 = vadd.f32 %v1641_v1, %v1556_v11  ;;  %v2276_v7 = vpop.f32.mrb[11].mxu0 }
 0x8c8   : > { %v1647_v8 = vadd.f32 %v1646_v6, %v1645_v15 }
 0x8ca   : > { %v1648_v62 = vmax.f32 %v1647_v8, 0.0 }
 0x8cc   : > { %2310 = vmatmul.mubr.f32.vlgmr.msra.gmra.mrb[6].mxu1 %v1648_v62 }
 0x99f   : > { %v1732_v10 = vpop.f32.mrb[6].mxu1 }
 0x9a0   : > { %v1733_v2 = vadd.f32 %v1732_v10, %v1665_v9  ;;  %v2311_v12 = vpop.f32.mrb[7].mxu1 }
 0x9a2   : > { %v1736_v16 = vmax.f32 %v1733_v2, 0.0 }
 0x9a4   : > { %v1738_v17 = vmul.f32 %v1737_v13, %v1736_v16 }
 0x9a6   : > { %v1740_v18 = vsel %vm1739_vm0, %v1738_v17, 0.0 }
 0x9a7   : > { %1741 = vadd.xlane.f32.xlu1 %v1740_v18 }
 0xa34   : > { %v1742_v20 = vpop.xlane.xlu1 %1741 }
 0xa35   : > { %v1744_v22 = vadd.f32 %v1743_v19, %v1742_v20 }
 0xa37   : > { %v1745_v23 = vsub.f32 0.0, %v1744_v22 }
 0xa39   : > { %v1746_v24 = vmul.f32 1.442695, %v1745_v23 }
 0xa3b   : > { %2576 = vpow2.f32 %v1746_v24 }
 0xa45   : > { %v2577_v5 = vpop.eup %2576 }
 0xa46   : > { %v1748_v25 = vadd.f32 1.0, %v2577_v5 }
 0xa48   : > { %2578 = vrcp.f32 %v1748_v25 }
 0xa52   : > { %v2579_v46 = vpop.eup %2578 }
 0xa53   : > { %1752 = vperm.xlu0 %2565, %v2579_v46  }
 0xad2   : > { %v1753_v26 = vpop.permute.xlu0 %1752 }
 0xad3   : > { %1755 = vst [vmem:[%s662_s25] sm:$0x1] %v1753_v26 }
 0xad4 PF: > { %s3390_s28 = sld [smem:[#allocation18_spill]] }
 0xada   : > { %s33_s26 = sadd.s32 1, %s3390_s28  }
 0xadb   : > { %p30_p9 = scmp.ge.s32.totalorder %s33_s26, 4  }
 0xadd   :  { %32 = sbr.rel (!%p30_p9) target bundleno = 10 (0xa), region = 150 }
 0xae4   :  { %1773 = vsyncpa [#allocation4], 1 }
 0xae5   :  { %1775 = vsyncpa [#allocation4 + $0x1], 1 }
 0xae6   :  { %1776 = vsyncpa [#allocation6], 1 }
 0xae7   :  { %1777 = vsyncpa [#allocation9], 1 }
 0xae8   :  { %1778 = vsyncpa [#allocation12], 1 }

</bundles_post_ra>
